<compile_context>
chip_gen: v6e
topology: v6e:2x2x1
jax: 0.10.0
libtpu: 0.0.40
codegen_flags: <defaults>
</compile_context>

<pallas_src>
import functools

import jax
import jax.numpy as jnp
from jax.experimental import pallas as pl
from jax.experimental.pallas import tpu as pltpu


# ---------------------------------------------------------------------------
# Model hyperparameters (match the PyTorch module defaults).
# ---------------------------------------------------------------------------
INPUT_DIM = 2
TIME_DIM = 1
IN_FEATS = INPUT_DIM + TIME_DIM      # 3, kept un-padded in HBM
HIDDEN_DIM = 128                     # hidden_dim=128 default
NUM_BLOCKS = 4
OUTPUT_DIM = INPUT_DIM               # output_dim=None -> output_dim == input_dim

LANE = 128
OUT_PAD = LANE                       # w_out padded to lane width (VMEM-resident only)


def _swish(z):
    return jax.nn.sigmoid(z) * z


# ---------------------------------------------------------------------------
# Pallas kernel: full ResNet forward for one tile of rows.
# ---------------------------------------------------------------------------
def resnet_kernel(h_ref,        # (TM, IN_FEATS)            f32   raw [x, t]
                  w_in_ref,     # (IN_FEATS, HIDDEN_DIM)    f32
                  b_in_ref,     # (1, HIDDEN_DIM)           f32
                  w1_ref,       # (NB, HIDDEN_DIM, HIDDEN_DIM)  bf16
                  b1_ref,       # (NB, 1, HIDDEN_DIM)       f32
                  w2_ref,       # (NB, HIDDEN_DIM, HIDDEN_DIM)  bf16
                  b2_ref,       # (NB, 1, HIDDEN_DIM)       f32
                  w_out_ref,    # (HIDDEN_DIM, OUT_PAD)     bf16 (zero-padded cols)
                  b_out_ref,    # (1, OUTPUT_DIM)           f32
                  o_ref):       # (TM, OUTPUT_DIM)          f32
    # --- input_proj: K=3 projection done as 3 broadcast-FMAs on the VPU ------
    h_in = h_ref[...]                        # (TM, 3) f32
    w_in = w_in_ref[...]                     # (3, H)  f32
    acc = b_in_ref[...]                      # (1, H) broadcasts over rows
    acc = acc + h_in[:, 0:1] * w_in[0:1, :]
    acc = acc + h_in[:, 1:2] * w_in[1:2, :]
    acc = acc + h_in[:, 2:3] * w_in[2:3, :]
    h = _swish(acc)                          # (TM, H) f32

    # --- residual blocks: swish(h + Linear2(swish(Linear1(h)))) --------------
    # bf16 operands on the MXU, f32 accumulation, f32 elementwise.
    for bi in range(NUM_BLOCKS):
        z = jnp.dot(h.astype(jnp.bfloat16), w1_ref[bi],
                    preferred_element_type=jnp.float32) + b1_ref[bi]
        z = _swish(z)
        z = jnp.dot(z.astype(jnp.bfloat16), w2_ref[bi],
                    preferred_element_type=jnp.float32) + b2_ref[bi]
        h = _swish(h + z)

    # --- output_proj: full-width MXU matmul, store only the real columns -----
    out = jnp.dot(h.astype(jnp.bfloat16), w_out_ref[...],
                  preferred_element_type=jnp.float32)      # (TM, OUT_PAD)
    out = out[:, :OUTPUT_DIM] + b_out_ref[...]              # (TM, OUTPUT_DIM)
    o_ref[...] = out.astype(o_ref.dtype)


# ---------------------------------------------------------------------------
# Parameter construction (PyTorch Linear shapes stored as (in, out) so the
# kernel computes x @ W + b). Kept in f32; matmul operands cast to bf16 in the
# wrapper.
# ---------------------------------------------------------------------------
def init_params(key):
    ks = jax.random.split(key, 3 + NUM_BLOCKS)
    scale = 0.1
    p = {}
    p["w_in"] = scale * jax.random.normal(ks[0], (IN_FEATS, HIDDEN_DIM), jnp.float32)
    p["b_in"] = scale * jax.random.normal(ks[1], (HIDDEN_DIM,), jnp.float32)

    w1, b1, w2, b2 = [], [], [], []
    for i in range(NUM_BLOCKS):
        k0, k1, k2, k3 = jax.random.split(ks[3 + i], 4)
        w1.append(scale * jax.random.normal(k0, (HIDDEN_DIM, HIDDEN_DIM), jnp.float32))
        b1.append(scale * jax.random.normal(k1, (HIDDEN_DIM,), jnp.float32))
        w2.append(scale * jax.random.normal(k2, (HIDDEN_DIM, HIDDEN_DIM), jnp.float32))
        b2.append(scale * jax.random.normal(k3, (HIDDEN_DIM,), jnp.float32))
    p["w1"] = jnp.stack(w1)                       # (NB, H, H)
    p["b1"] = jnp.stack(b1)[:, None, :]           # (NB, 1, H)
    p["w2"] = jnp.stack(w2)                       # (NB, H, H)
    p["b2"] = jnp.stack(b2)[:, None, :]           # (NB, 1, H)

    p["w_out"] = scale * jax.random.normal(ks[2], (HIDDEN_DIM, OUTPUT_DIM), jnp.float32)
    p["b_out"] = scale * jax.random.normal(
        jax.random.fold_in(ks[2], 1), (OUTPUT_DIM,), jnp.float32)
    return p


# ---------------------------------------------------------------------------
# Wrapper: flattening, tiling, pallas_call, reshape back.
# ---------------------------------------------------------------------------
@functools.partial(jax.jit, static_argnames=("tm",))
def resnet_forward(params, x, t, tm=512):
    """Mirrors ResNet.forward(x, t). x: (..., INPUT_DIM), t: one scalar per
    flattened row (broadcastable)."""
    sz = x.shape
    xf = x.reshape(-1, INPUT_DIM).astype(jnp.float32)                 # (N, 2)
    n = xf.shape[0]
    tf = jnp.broadcast_to(t.reshape(-1, 1).astype(jnp.float32), (n, 1))
    h = jnp.concatenate([xf, tf], axis=1)                             # (N, 3)

    # Row-tile choice (trace-time Python ints): large enough to amortize the
    # ~0.35us per-grid-step overhead, but capped so the "parallel" grid keeps
    # at least 2 steps when N is small (v7x dual TensorCore) and stays a
    # multiple of 8 sublanes.
    tm_eff = min(tm, max(8, (((n + 1) // 2 + 7) // 8) * 8))
    n_pad = ((n + tm_eff - 1) // tm_eff) * tm_eff
    grid = (n_pad // tm_eff,)

    # Input stays lane-narrow (N, 3) — no 128-lane padding in HBM.
    h_p = jnp.zeros((n_pad, IN_FEATS), jnp.float32).at[:n].set(h)

    # Matmul operands in bf16 (MXU-native on v5e/v6e/v7x); biases stay f32.
    w_in = params["w_in"].astype(jnp.float32)                         # VPU path
    b_in = params["b_in"][None, :].astype(jnp.float32)                # (1, H)
    w1 = params["w1"].astype(jnp.bfloat16)
    w2 = params["w2"].astype(jnp.bfloat16)
    b1 = params["b1"].astype(jnp.float32)
    b2 = params["b2"].astype(jnp.float32)
    w_out_p = (jnp.zeros((HIDDEN_DIM, OUT_PAD), jnp.float32)
               .at[:, :OUTPUT_DIM].set(params["w_out"])).astype(jnp.bfloat16)
    b_out = params["b_out"][None, :].astype(jnp.float32)              # (1, 2)

    out_p = pl.pallas_call(
        resnet_kernel,
        out_shape=jax.ShapeDtypeStruct((n_pad, OUTPUT_DIM), jnp.float32),
        grid_spec=pltpu.PrefetchScalarGridSpec(
            num_scalar_prefetch=0,
            grid=grid,
            in_specs=[
                pl.BlockSpec((tm_eff, IN_FEATS), lambda i: (i, 0)),
                pl.BlockSpec((IN_FEATS, HIDDEN_DIM), lambda i: (0, 0)),
                pl.BlockSpec((1, HIDDEN_DIM), lambda i: (0, 0)),
                pl.BlockSpec((NUM_BLOCKS, HIDDEN_DIM, HIDDEN_DIM),
                             lambda i: (0, 0, 0)),
                pl.BlockSpec((NUM_BLOCKS, 1, HIDDEN_DIM), lambda i: (0, 0, 0)),
                pl.BlockSpec((NUM_BLOCKS, HIDDEN_DIM, HIDDEN_DIM),
                             lambda i: (0, 0, 0)),
                pl.BlockSpec((NUM_BLOCKS, 1, HIDDEN_DIM), lambda i: (0, 0, 0)),
                pl.BlockSpec((HIDDEN_DIM, OUT_PAD), lambda i: (0, 0)),
                pl.BlockSpec((1, OUTPUT_DIM), lambda i: (0, 0)),
            ],
            out_specs=pl.BlockSpec((tm_eff, OUTPUT_DIM), lambda i: (i, 0)),
        ),
        compiler_params=pltpu.CompilerParams(
            dimension_semantics=("parallel",)),
    )(h_p, w_in, b_in, w1, b1, w2, b2, w_out_p, b_out)

    out = out_p[:n]                         # row un-pad only; no column slice
    # output_dim == input_dim -> reshape back to original shape
    return out.reshape(sz)


# ---------------------------------------------------------------------------
# Pure-JAX references for validation.
# ---------------------------------------------------------------------------
def _reference(params, x, t, *, bf16_matmuls):
    sz = x.shape
    xf = x.reshape(-1, INPUT_DIM).astype(jnp.float32)
    n = xf.shape[0]
    tf = jnp.broadcast_to(t.reshape(-1, 1).astype(jnp.float32), (n, 1))
    h = jnp.concatenate([xf, tf], axis=1)

    def mm(a, w):
        if bf16_matmuls:
            return jnp.dot(a.astype(jnp.bfloat16), w.astype(jnp.bfloat16),
                           preferred_element_type=jnp.float32)
        return a @ w

    h = _swish(h @ params["w_in"] + params["b_in"])
    for bi in range(NUM_BLOCKS):
        z = _swish(mm(h, params["w1"][bi]) + params["b1"][bi])
        z = mm(z, params["w2"][bi]) + params["b2"][bi]
        h = _swish(h + z)
    out = mm(h, params["w_out"]) + params["b_out"]
    return out.reshape(sz)


if __name__ == "__main__":
    key = jax.random.PRNGKey(0)
    kp, kx, kt = jax.random.split(key, 3)

    params = init_params(kp)

    # Small case: x (2, 64, 2) -> N=128 flattened rows (grid of 2 tiles).
    x = jax.random.normal(kx, (2, 64, INPUT_DIM), jnp.float32)
    t = jax.random.uniform(kt, (2, 64), jnp.float32)

    out = jax.block_until_ready(resnet_forward(params, x, t))
    assert out.shape == x.shape, (out.shape, x.shape)

    ref_bf16 = _reference(params, x, t, bf16_matmuls=True)   # matches kernel numerics
    ref_f32 = _reference(params, x, t, bf16_matmuls=False)   # PyTorch-f32 semantics
    assert jnp.allclose(out, ref_bf16, rtol=2e-3, atol=2e-3), float(
        jnp.max(jnp.abs(out - ref_bf16)))
    assert jnp.allclose(out, ref_f32, rtol=1e-1, atol=1e-1), float(
        jnp.max(jnp.abs(out - ref_f32)))

    # Larger case exercising the big-tile path (N=4096 rows, tm_eff=512).
    kx2, kt2 = jax.random.split(jax.random.fold_in(key, 7))
    x2 = jax.random.normal(kx2, (8, 512, INPUT_DIM), jnp.float32)
    t2 = jax.random.uniform(kt2, (8, 512), jnp.float32)
    out2 = jax.block_until_ready(resnet_forward(params, x2, t2))
    ref2 = _reference(params, x2, t2, bf16_matmuls=True)
    assert out2.shape == x2.shape
    assert jnp.allclose(out2, ref2, rtol=2e-3, atol=2e-3), float(
        jnp.max(jnp.abs(out2 - ref2)))

    print("KERNEL_OK")
</pallas_src>

<mosaic_0001>
module attributes {stable_mosaic.version = 11 : i64} {
  func.func @resnet_kernel(%arg0: i32, %arg1: memref<64x3xf32, #tpu.memory_space<vmem>>, %arg2: memref<3x128xf32, #tpu.memory_space<vmem>>, %arg3: memref<1x128xf32, #tpu.memory_space<vmem>>, %arg4: memref<4x128x128xbf16, #tpu.memory_space<vmem>>, %arg5: memref<4x1x128xf32, #tpu.memory_space<vmem>>, %arg6: memref<4x128x128xbf16, #tpu.memory_space<vmem>>, %arg7: memref<4x1x128xf32, #tpu.memory_space<vmem>>, %arg8: memref<128x128xbf16, #tpu.memory_space<vmem>>, %arg9: memref<1x2xf32, #tpu.memory_space<vmem>>, %arg10: memref<64x2xf32, #tpu.memory_space<vmem>>) attributes {dimension_semantics = [#tpu.dimension_semantics<parallel>], iteration_bounds = array<i64: 2>, scalar_prefetch = 0 : i64, scratch_operands = 0 : i64, tpu.core_type = #tpu.core_type<tc>, window_params = [{transform_indices = @transform_0, window_bounds = array<i64: 64, 3>}, {pipeline_mode = #tpu.pipeline_mode<synchronous>, transform_indices = @transform_1, window_bounds = array<i64: 3, 128>}, {pipeline_mode = #tpu.pipeline_mode<synchronous>, transform_indices = @transform_2, window_bounds = array<i64: 1, 128>}, {pipeline_mode = #tpu.pipeline_mode<synchronous>, transform_indices = @transform_3, window_bounds = array<i64: 4, 128, 128>}, {pipeline_mode = #tpu.pipeline_mode<synchronous>, transform_indices = @transform_4, window_bounds = array<i64: 4, 1, 128>}, {pipeline_mode = #tpu.pipeline_mode<synchronous>, transform_indices = @transform_5, window_bounds = array<i64: 4, 128, 128>}, {pipeline_mode = #tpu.pipeline_mode<synchronous>, transform_indices = @transform_6, window_bounds = array<i64: 4, 1, 128>}, {pipeline_mode = #tpu.pipeline_mode<synchronous>, transform_indices = @transform_7, window_bounds = array<i64: 128, 128>}, {pipeline_mode = #tpu.pipeline_mode<synchronous>, transform_indices = @transform_8, window_bounds = array<i64: 1, 2>}, {transform_indices = @transform_9, window_bounds = array<i64: 64, 2>}]} {
    %c0 = arith.constant 0 : index
    %c0_0 = arith.constant 0 : index
    %0 = vector.load %arg1[%c0, %c0_0] : memref<64x3xf32, #tpu.memory_space<vmem>>, vector<64x3xf32>
    %c0_1 = arith.constant 0 : index
    %c0_2 = arith.constant 0 : index
    %1 = vector.load %arg2[%c0_1, %c0_2] : memref<3x128xf32, #tpu.memory_space<vmem>>, vector<3x128xf32>
    %c0_3 = arith.constant 0 : index
    %c0_4 = arith.constant 0 : index
    %2 = vector.load %arg3[%c0_3, %c0_4] : memref<1x128xf32, #tpu.memory_space<vmem>>, vector<1x128xf32>
    %3 = vector.extract_strided_slice %0 {offsets = [0, 0], sizes = [64, 1], strides = [1, 1]} : vector<64x3xf32> to vector<64x1xf32>
    %4 = vector.extract_strided_slice %1 {offsets = [0, 0], sizes = [1, 128], strides = [1, 1]} : vector<3x128xf32> to vector<1x128xf32>
    %5 = vector.broadcast %3 : vector<64x1xf32> to vector<64x128xf32>
    %6 = vector.broadcast %4 : vector<1x128xf32> to vector<64x128xf32>
    %7 = arith.mulf %5, %6 : vector<64x128xf32>
    %8 = vector.broadcast %2 : vector<1x128xf32> to vector<64x128xf32>
    %9 = arith.addf %8, %7 : vector<64x128xf32>
    %10 = vector.extract_strided_slice %0 {offsets = [0, 1], sizes = [64, 1], strides = [1, 1]} : vector<64x3xf32> to vector<64x1xf32>
    %11 = vector.extract_strided_slice %1 {offsets = [1, 0], sizes = [1, 128], strides = [1, 1]} : vector<3x128xf32> to vector<1x128xf32>
    %12 = vector.broadcast %10 : vector<64x1xf32> to vector<64x128xf32>
    %13 = vector.broadcast %11 : vector<1x128xf32> to vector<64x128xf32>
    %14 = arith.mulf %12, %13 : vector<64x128xf32>
    %15 = arith.addf %9, %14 : vector<64x128xf32>
    %16 = vector.extract_strided_slice %0 {offsets = [0, 2], sizes = [64, 1], strides = [1, 1]} : vector<64x3xf32> to vector<64x1xf32>
    %17 = vector.extract_strided_slice %1 {offsets = [2, 0], sizes = [1, 128], strides = [1, 1]} : vector<3x128xf32> to vector<1x128xf32>
    %18 = vector.broadcast %16 : vector<64x1xf32> to vector<64x128xf32>
    %19 = vector.broadcast %17 : vector<1x128xf32> to vector<64x128xf32>
    %20 = arith.mulf %18, %19 : vector<64x128xf32>
    %21 = arith.addf %15, %20 : vector<64x128xf32>
    %22 = arith.negf %21 : vector<64x128xf32>
    %23 = math.exp %22 : vector<64x128xf32>
    %cst = arith.constant 1.000000e+00 : f32
    %24 = vector.broadcast %cst : f32 to vector<64x128xf32>
    %25 = arith.addf %24, %23 : vector<64x128xf32>
    %26 = arith.divf %24, %25 : vector<64x128xf32>
    %27 = arith.mulf %26, %21 : vector<64x128xf32>
    %28 = arith.truncf %27 : vector<64x128xf32> to vector<64x128xbf16>
    %c0_5 = arith.constant 0 : index
    %c0_6 = arith.constant 0 : index
    %c0_7 = arith.constant 0 : index
    %29 = vector.load %arg4[%c0_5, %c0_6, %c0_7] : memref<4x128x128xbf16, #tpu.memory_space<vmem>>, vector<1x128x128xbf16>
    %30 = vector.shape_cast %29 : vector<1x128x128xbf16> to vector<128x128xbf16>
    %cst_8 = arith.constant dense<0.000000e+00> : vector<64x128xf32>
    %31 = tpu.matmul %28, %30, %cst_8 {dimension_numbers = #tpu.dot_dimension_numbers<[1], [0], [0], [1], [0, 0, 1, 1], [], []>} : vector<64x128xbf16>, vector<128x128xbf16>, vector<64x128xf32> -> vector<64x128xf32>
    %c0_9 = arith.constant 0 : index
    %c0_10 = arith.constant 0 : index
    %c0_11 = arith.constant 0 : index
    %32 = vector.load %arg5[%c0_9, %c0_10, %c0_11] : memref<4x1x128xf32, #tpu.memory_space<vmem>>, vector<1x1x128xf32>
    %33 = vector.shape_cast %32 : vector<1x1x128xf32> to vector<1x128xf32>
    %34 = vector.broadcast %33 : vector<1x128xf32> to vector<64x128xf32>
    %35 = arith.addf %31, %34 : vector<64x128xf32>
    %36 = arith.negf %35 : vector<64x128xf32>
    %37 = math.exp %36 : vector<64x128xf32>
    %cst_12 = arith.constant 1.000000e+00 : f32
    %38 = vector.broadcast %cst_12 : f32 to vector<64x128xf32>
    %39 = arith.addf %38, %37 : vector<64x128xf32>
    %40 = arith.divf %38, %39 : vector<64x128xf32>
    %41 = arith.mulf %40, %35 : vector<64x128xf32>
    %42 = arith.truncf %41 : vector<64x128xf32> to vector<64x128xbf16>
    %c0_13 = arith.constant 0 : index
    %c0_14 = arith.constant 0 : index
    %c0_15 = arith.constant 0 : index
    %43 = vector.load %arg6[%c0_13, %c0_14, %c0_15] : memref<4x128x128xbf16, #tpu.memory_space<vmem>>, vector<1x128x128xbf16>
    %44 = vector.shape_cast %43 : vector<1x128x128xbf16> to vector<128x128xbf16>
    %cst_16 = arith.constant dense<0.000000e+00> : vector<64x128xf32>
    %45 = tpu.matmul %42, %44, %cst_16 {dimension_numbers = #tpu.dot_dimension_numbers<[1], [0], [0], [1], [0, 0, 1, 1], [], []>} : vector<64x128xbf16>, vector<128x128xbf16>, vector<64x128xf32> -> vector<64x128xf32>
    %c0_17 = arith.constant 0 : index
    %c0_18 = arith.constant 0 : index
    %c0_19 = arith.constant 0 : index
    %46 = vector.load %arg7[%c0_17, %c0_18, %c0_19] : memref<4x1x128xf32, #tpu.memory_space<vmem>>, vector<1x1x128xf32>
    %47 = vector.shape_cast %46 : vector<1x1x128xf32> to vector<1x128xf32>
    %48 = vector.broadcast %47 : vector<1x128xf32> to vector<64x128xf32>
    %49 = arith.addf %45, %48 : vector<64x128xf32>
    %50 = arith.addf %27, %49 : vector<64x128xf32>
    %51 = arith.negf %50 : vector<64x128xf32>
    %52 = math.exp %51 : vector<64x128xf32>
    %cst_20 = arith.constant 1.000000e+00 : f32
    %53 = vector.broadcast %cst_20 : f32 to vector<64x128xf32>
    %54 = arith.addf %53, %52 : vector<64x128xf32>
    %55 = arith.divf %53, %54 : vector<64x128xf32>
    %56 = arith.mulf %55, %50 : vector<64x128xf32>
    %57 = arith.truncf %56 : vector<64x128xf32> to vector<64x128xbf16>
    %c1 = arith.constant 1 : index
    %c0_21 = arith.constant 0 : index
    %c0_22 = arith.constant 0 : index
    %58 = vector.load %arg4[%c1, %c0_21, %c0_22] : memref<4x128x128xbf16, #tpu.memory_space<vmem>>, vector<1x128x128xbf16>
    %59 = vector.shape_cast %58 : vector<1x128x128xbf16> to vector<128x128xbf16>
    %cst_23 = arith.constant dense<0.000000e+00> : vector<64x128xf32>
    %60 = tpu.matmul %57, %59, %cst_23 {dimension_numbers = #tpu.dot_dimension_numbers<[1], [0], [0], [1], [0, 0, 1, 1], [], []>} : vector<64x128xbf16>, vector<128x128xbf16>, vector<64x128xf32> -> vector<64x128xf32>
    %c1_24 = arith.constant 1 : index
    %c0_25 = arith.constant 0 : index
    %c0_26 = arith.constant 0 : index
    %61 = vector.load %arg5[%c1_24, %c0_25, %c0_26] : memref<4x1x128xf32, #tpu.memory_space<vmem>>, vector<1x1x128xf32>
    %62 = vector.shape_cast %61 : vector<1x1x128xf32> to vector<1x128xf32>
    %63 = vector.broadcast %62 : vector<1x128xf32> to vector<64x128xf32>
    %64 = arith.addf %60, %63 : vector<64x128xf32>
    %65 = arith.negf %64 : vector<64x128xf32>
    %66 = math.exp %65 : vector<64x128xf32>
    %cst_27 = arith.constant 1.000000e+00 : f32
    %67 = vector.broadcast %cst_27 : f32 to vector<64x128xf32>
    %68 = arith.addf %67, %66 : vector<64x128xf32>
    %69 = arith.divf %67, %68 : vector<64x128xf32>
    %70 = arith.mulf %69, %64 : vector<64x128xf32>
    %71 = arith.truncf %70 : vector<64x128xf32> to vector<64x128xbf16>
    %c1_28 = arith.constant 1 : index
    %c0_29 = arith.constant 0 : index
    %c0_30 = arith.constant 0 : index
    %72 = vector.load %arg6[%c1_28, %c0_29, %c0_30] : memref<4x128x128xbf16, #tpu.memory_space<vmem>>, vector<1x128x128xbf16>
    %73 = vector.shape_cast %72 : vector<1x128x128xbf16> to vector<128x128xbf16>
    %cst_31 = arith.constant dense<0.000000e+00> : vector<64x128xf32>
    %74 = tpu.matmul %71, %73, %cst_31 {dimension_numbers = #tpu.dot_dimension_numbers<[1], [0], [0], [1], [0, 0, 1, 1], [], []>} : vector<64x128xbf16>, vector<128x128xbf16>, vector<64x128xf32> -> vector<64x128xf32>
    %c1_32 = arith.constant 1 : index
    %c0_33 = arith.constant 0 : index
    %c0_34 = arith.constant 0 : index
    %75 = vector.load %arg7[%c1_32, %c0_33, %c0_34] : memref<4x1x128xf32, #tpu.memory_space<vmem>>, vector<1x1x128xf32>
    %76 = vector.shape_cast %75 : vector<1x1x128xf32> to vector<1x128xf32>
    %77 = vector.broadcast %76 : vector<1x128xf32> to vector<64x128xf32>
    %78 = arith.addf %74, %77 : vector<64x128xf32>
    %79 = arith.addf %56, %78 : vector<64x128xf32>
    %80 = arith.negf %79 : vector<64x128xf32>
    %81 = math.exp %80 : vector<64x128xf32>
    %cst_35 = arith.constant 1.000000e+00 : f32
    %82 = vector.broadcast %cst_35 : f32 to vector<64x128xf32>
    %83 = arith.addf %82, %81 : vector<64x128xf32>
    %84 = arith.divf %82, %83 : vector<64x128xf32>
    %85 = arith.mulf %84, %79 : vector<64x128xf32>
    %86 = arith.truncf %85 : vector<64x128xf32> to vector<64x128xbf16>
    %c2 = arith.constant 2 : index
    %c0_36 = arith.constant 0 : index
    %c0_37 = arith.constant 0 : index
    %87 = vector.load %arg4[%c2, %c0_36, %c0_37] : memref<4x128x128xbf16, #tpu.memory_space<vmem>>, vector<1x128x128xbf16>
    %88 = vector.shape_cast %87 : vector<1x128x128xbf16> to vector<128x128xbf16>
    %cst_38 = arith.constant dense<0.000000e+00> : vector<64x128xf32>
    %89 = tpu.matmul %86, %88, %cst_38 {dimension_numbers = #tpu.dot_dimension_numbers<[1], [0], [0], [1], [0, 0, 1, 1], [], []>} : vector<64x128xbf16>, vector<128x128xbf16>, vector<64x128xf32> -> vector<64x128xf32>
    %c2_39 = arith.constant 2 : index
    %c0_40 = arith.constant 0 : index
    %c0_41 = arith.constant 0 : index
    %90 = vector.load %arg5[%c2_39, %c0_40, %c0_41] : memref<4x1x128xf32, #tpu.memory_space<vmem>>, vector<1x1x128xf32>
    %91 = vector.shape_cast %90 : vector<1x1x128xf32> to vector<1x128xf32>
    %92 = vector.broadcast %91 : vector<1x128xf32> to vector<64x128xf32>
    %93 = arith.addf %89, %92 : vector<64x128xf32>
    %94 = arith.negf %93 : vector<64x128xf32>
    %95 = math.exp %94 : vector<64x128xf32>
    %cst_42 = arith.constant 1.000000e+00 : f32
    %96 = vector.broadcast %cst_42 : f32 to vector<64x128xf32>
    %97 = arith.addf %96, %95 : vector<64x128xf32>
    %98 = arith.divf %96, %97 : vector<64x128xf32>
    %99 = arith.mulf %98, %93 : vector<64x128xf32>
    %100 = arith.truncf %99 : vector<64x128xf32> to vector<64x128xbf16>
    %c2_43 = arith.constant 2 : index
    %c0_44 = arith.constant 0 : index
    %c0_45 = arith.constant 0 : index
    %101 = vector.load %arg6[%c2_43, %c0_44, %c0_45] : memref<4x128x128xbf16, #tpu.memory_space<vmem>>, vector<1x128x128xbf16>
    %102 = vector.shape_cast %101 : vector<1x128x128xbf16> to vector<128x128xbf16>
    %cst_46 = arith.constant dense<0.000000e+00> : vector<64x128xf32>
    %103 = tpu.matmul %100, %102, %cst_46 {dimension_numbers = #tpu.dot_dimension_numbers<[1], [0], [0], [1], [0, 0, 1, 1], [], []>} : vector<64x128xbf16>, vector<128x128xbf16>, vector<64x128xf32> -> vector<64x128xf32>
    %c2_47 = arith.constant 2 : index
    %c0_48 = arith.constant 0 : index
    %c0_49 = arith.constant 0 : index
    %104 = vector.load %arg7[%c2_47, %c0_48, %c0_49] : memref<4x1x128xf32, #tpu.memory_space<vmem>>, vector<1x1x128xf32>
    %105 = vector.shape_cast %104 : vector<1x1x128xf32> to vector<1x128xf32>
    %106 = vector.broadcast %105 : vector<1x128xf32> to vector<64x128xf32>
    %107 = arith.addf %103, %106 : vector<64x128xf32>
    %108 = arith.addf %85, %107 : vector<64x128xf32>
    %109 = arith.negf %108 : vector<64x128xf32>
    %110 = math.exp %109 : vector<64x128xf32>
    %cst_50 = arith.constant 1.000000e+00 : f32
    %111 = vector.broadcast %cst_50 : f32 to vector<64x128xf32>
    %112 = arith.addf %111, %110 : vector<64x128xf32>
    %113 = arith.divf %111, %112 : vector<64x128xf32>
    %114 = arith.mulf %113, %108 : vector<64x128xf32>
    %115 = arith.truncf %114 : vector<64x128xf32> to vector<64x128xbf16>
    %c3 = arith.constant 3 : index
    %c0_51 = arith.constant 0 : index
    %c0_52 = arith.constant 0 : index
    %116 = vector.load %arg4[%c3, %c0_51, %c0_52] : memref<4x128x128xbf16, #tpu.memory_space<vmem>>, vector<1x128x128xbf16>
    %117 = vector.shape_cast %116 : vector<1x128x128xbf16> to vector<128x128xbf16>
    %cst_53 = arith.constant dense<0.000000e+00> : vector<64x128xf32>
    %118 = tpu.matmul %115, %117, %cst_53 {dimension_numbers = #tpu.dot_dimension_numbers<[1], [0], [0], [1], [0, 0, 1, 1], [], []>} : vector<64x128xbf16>, vector<128x128xbf16>, vector<64x128xf32> -> vector<64x128xf32>
    %c3_54 = arith.constant 3 : index
    %c0_55 = arith.constant 0 : index
    %c0_56 = arith.constant 0 : index
    %119 = vector.load %arg5[%c3_54, %c0_55, %c0_56] : memref<4x1x128xf32, #tpu.memory_space<vmem>>, vector<1x1x128xf32>
    %120 = vector.shape_cast %119 : vector<1x1x128xf32> to vector<1x128xf32>
    %121 = vector.broadcast %120 : vector<1x128xf32> to vector<64x128xf32>
    %122 = arith.addf %118, %121 : vector<64x128xf32>
    %123 = arith.negf %122 : vector<64x128xf32>
    %124 = math.exp %123 : vector<64x128xf32>
    %cst_57 = arith.constant 1.000000e+00 : f32
    %125 = vector.broadcast %cst_57 : f32 to vector<64x128xf32>
    %126 = arith.addf %125, %124 : vector<64x128xf32>
    %127 = arith.divf %125, %126 : vector<64x128xf32>
    %128 = arith.mulf %127, %122 : vector<64x128xf32>
    %129 = arith.truncf %128 : vector<64x128xf32> to vector<64x128xbf16>
    %c3_58 = arith.constant 3 : index
    %c0_59 = arith.constant 0 : index
    %c0_60 = arith.constant 0 : index
    %130 = vector.load %arg6[%c3_58, %c0_59, %c0_60] : memref<4x128x128xbf16, #tpu.memory_space<vmem>>, vector<1x128x128xbf16>
    %131 = vector.shape_cast %130 : vector<1x128x128xbf16> to vector<128x128xbf16>
    %cst_61 = arith.constant dense<0.000000e+00> : vector<64x128xf32>
    %132 = tpu.matmul %129, %131, %cst_61 {dimension_numbers = #tpu.dot_dimension_numbers<[1], [0], [0], [1], [0, 0, 1, 1], [], []>} : vector<64x128xbf16>, vector<128x128xbf16>, vector<64x128xf32> -> vector<64x128xf32>
    %c3_62 = arith.constant 3 : index
    %c0_63 = arith.constant 0 : index
    %c0_64 = arith.constant 0 : index
    %133 = vector.load %arg7[%c3_62, %c0_63, %c0_64] : memref<4x1x128xf32, #tpu.memory_space<vmem>>, vector<1x1x128xf32>
    %134 = vector.shape_cast %133 : vector<1x1x128xf32> to vector<1x128xf32>
    %135 = vector.broadcast %134 : vector<1x128xf32> to vector<64x128xf32>
    %136 = arith.addf %132, %135 : vector<64x128xf32>
    %137 = arith.addf %114, %136 : vector<64x128xf32>
    %138 = arith.negf %137 : vector<64x128xf32>
    %139 = math.exp %138 : vector<64x128xf32>
    %cst_65 = arith.constant 1.000000e+00 : f32
    %140 = vector.broadcast %cst_65 : f32 to vector<64x128xf32>
    %141 = arith.addf %140, %139 : vector<64x128xf32>
    %142 = arith.divf %140, %141 : vector<64x128xf32>
    %143 = arith.mulf %142, %137 : vector<64x128xf32>
    %144 = arith.truncf %143 : vector<64x128xf32> to vector<64x128xbf16>
    %c0_66 = arith.constant 0 : index
    %c0_67 = arith.constant 0 : index
    %145 = vector.load %arg8[%c0_66, %c0_67] : memref<128x128xbf16, #tpu.memory_space<vmem>>, vector<128x128xbf16>
    %cst_68 = arith.constant dense<0.000000e+00> : vector<64x128xf32>
    %146 = tpu.matmul %144, %145, %cst_68 {dimension_numbers = #tpu.dot_dimension_numbers<[1], [0], [0], [1], [0, 0, 1, 1], [], []>} : vector<64x128xbf16>, vector<128x128xbf16>, vector<64x128xf32> -> vector<64x128xf32>
    %147 = vector.extract_strided_slice %146 {offsets = [0, 0], sizes = [64, 2], strides = [1, 1]} : vector<64x128xf32> to vector<64x2xf32>
    %c0_69 = arith.constant 0 : index
    %c0_70 = arith.constant 0 : index
    %148 = vector.load %arg9[%c0_69, %c0_70] : memref<1x2xf32, #tpu.memory_space<vmem>>, vector<1x2xf32>
    %149 = vector.broadcast %148 : vector<1x2xf32> to vector<64x2xf32>
    %150 = arith.addf %147, %149 : vector<64x2xf32>
    %c0_71 = arith.constant 0 : index
    %c0_72 = arith.constant 0 : index
    %151 = vector.load %arg10[%c0_71, %c0_72] : memref<64x2xf32, #tpu.memory_space<vmem>>, vector<64x2xf32>
    tpu.vector_store %arg10[%c0_71, %c0_72], %150 {strides = array<i32>} : memref<64x2xf32, #tpu.memory_space<vmem>>, vector<64x2xf32>,
    return
  }
  func.func @transform_0(%arg0: i32) -> (i32, i32) {
    %c0_i32 = arith.constant 0 : i32
    %c0_i32_0 = arith.constant 0 : i32
    return %arg0, %c0_i32 : i32, i32
  }
  func.func @transform_1(%arg0: i32) -> (i32, i32) {
    %c0_i32 = arith.constant 0 : i32
    %c0_i32_0 = arith.constant 0 : i32
    %c0_i32_1 = arith.constant 0 : i32
    return %c0_i32, %c0_i32_0 : i32, i32
  }
  func.func @transform_2(%arg0: i32) -> (i32, i32) {
    %c0_i32 = arith.constant 0 : i32
    %c0_i32_0 = arith.constant 0 : i32
    %c0_i32_1 = arith.constant 0 : i32
    return %c0_i32, %c0_i32_0 : i32, i32
  }
  func.func @transform_3(%arg0: i32) -> (i32, i32, i32) {
    %c0_i32 = arith.constant 0 : i32
    %c0_i32_0 = arith.constant 0 : i32
    %c0_i32_1 = arith.constant 0 : i32
    %c0_i32_2 = arith.constant 0 : i32
    return %c0_i32, %c0_i32_0, %c0_i32_1 : i32, i32, i32
  }
  func.func @transform_4(%arg0: i32) -> (i32, i32, i32) {
    %c0_i32 = arith.constant 0 : i32
    %c0_i32_0 = arith.constant 0 : i32
    %c0_i32_1 = arith.constant 0 : i32
    %c0_i32_2 = arith.constant 0 : i32
    return %c0_i32, %c0_i32_0, %c0_i32_1 : i32, i32, i32
  }
  func.func @transform_5(%arg0: i32) -> (i32, i32, i32) {
    %c0_i32 = arith.constant 0 : i32
    %c0_i32_0 = arith.constant 0 : i32
    %c0_i32_1 = arith.constant 0 : i32
    %c0_i32_2 = arith.constant 0 : i32
    return %c0_i32, %c0_i32_0, %c0_i32_1 : i32, i32, i32
  }
  func.func @transform_6(%arg0: i32) -> (i32, i32, i32) {
    %c0_i32 = arith.constant 0 : i32
    %c0_i32_0 = arith.constant 0 : i32
    %c0_i32_1 = arith.constant 0 : i32
    %c0_i32_2 = arith.constant 0 : i32
    return %c0_i32, %c0_i32_0, %c0_i32_1 : i32, i32, i32
  }
  func.func @transform_7(%arg0: i32) -> (i32, i32) {
    %c0_i32 = arith.constant 0 : i32
    %c0_i32_0 = arith.constant 0 : i32
    %c0_i32_1 = arith.constant 0 : i32
    return %c0_i32, %c0_i32_0 : i32, i32
  }
  func.func @transform_8(%arg0: i32) -> (i32, i32) {
    %c0_i32 = arith.constant 0 : i32
    %c0_i32_0 = arith.constant 0 : i32
    %c0_i32_1 = arith.constant 0 : i32
    return %c0_i32, %c0_i32_0 : i32, i32
  }
  func.func @transform_9(%arg0: i32) -> (i32, i32) {
    %c0_i32 = arith.constant 0 : i32
    %c0_i32_0 = arith.constant 0 : i32
    return %arg0, %c0_i32 : i32, i32
  }
}

</mosaic_0001>

<bundles_post_ra>
// kernel: resnet_forward.1
= control target key start
LH: loop header
LB: loop body
LE: loop exit
PB: predicated region body
PF: predicated region fallthrough
CT: control target
= control target key end

     0   :  { %s3448_s30 = smov 0   ;;  %s3913_s0 = inlined_call_operand.vmem [shape: f32[128,3], index: 0, kind: input, shape index: {}]   ;;  %s3914_s1 = inlined_call_operand.vmem [shape: f32[3,128], index: 1, kind: input, shape index: {}]   ;;  %s3915_s2 = inlined_call_operand.vmem [shape: f32[1,128], index: 2, kind: input, shape index: {}]   ;;  %s3916_s3 = inlined_call_operand.vmem [shape: bf16[4,128,128], index: 3, kind: input, shape index: {}]   ;;  %s3917_s4 = inlined_call_operand.vmem [shape: f32[4,1,128], index: 4, kind: input, shape index: {}]   ;;  %s3918_s5 = inlined_call_operand.vmem [shape: bf16[4,128,128], index: 5, kind: input, shape index: {}]   ;;  %s3919_s6 = inlined_call_operand.vmem [shape: f32[4,1,128], index: 6, kind: input, shape index: {}]   ;;  %s3920_s7 = inlined_call_operand.vmem [shape: bf16[128,128], index: 7, kind: input, shape index: {}]   ;;  %s3921_s8 = inlined_call_operand.vmem [shape: f32[1,2], index: 8, kind: input, shape index: {}]   ;;  %s3922_s9 = inlined_call_operand.vmem [shape: f32[128,2], index: 9, kind: output, shape index: {}]  }
   0x1 LB: > { %s2398_s10 = sadd.s32 4294967295, %s3393_s30   ;;  %p2402_p0 = scmp.ge.s32.totalorder %s3393_s30, 1  ;;  %s3393_s30 = sphi %s3448_s30, %s19_s30  }
   0x2   : > { %p288_p1 = scmp.lt.s32.totalorder %s3393_s30, 3 }
   0x4   : > { %p289_p2 = pnand %p2402_p0, %p288_p1 }
   0x5   : > { %s2403_s11 = sshll.u32 (!%p289_p2), %s2398_s10, 3 }
   0x6   : > { %292 = sbr.rel (%p289_p2) target bundleno = 2350 (0x92e), region = 56  ;;  %p325_p3 = scmp.lt.s32.totalorder (!%p289_p2), %s2403_s11, 15 }
   0xb   : > { %v3395_v0 = vmov 0   ;;  %s3924_s11 = smov (!%p325_p3, %s2403_s11), 15  ;;  %v3396_v5 = vmov 2   ;;  %v3397_v6 = vmov 1   ;;  %v3027_v11 = vld [vmem:[%s3916_s3 + $0x38] sm:$0xff]   ;;  %v3028_v12 = vld [vmem:[%s3916_s3 + $0x30] sm:$0xff]   ;;  %v387_v19 = vlaneseq }
   0xc   : > { %3017 = vset.pattern.permute.xlu1 %v3395_v0  ;;  %3016 = vset.pattern.permute.xlu0 %v3395_v0  ;;  %s2404_s12 = sshll.u32 %s3924_s11, 3  ;;  %v3029_v13 = vld [vmem:[%s3916_s3 + $0x28] sm:$0xff]   ;;  %v3030_v14 = vld [vmem:[%s3916_s3 + $0x20] sm:$0xff]   ;;  %v3031_v15 = vld [vmem:[%s3916_s3 + $0x18] sm:$0xff]   ;;  %vm2333_vm0 = vcmask 15360  }
   0xd   : > { %s328_s15 = scalar_lea.vmem %s3913_s0, %s2404_s12  ;;  %2773 = vmatprep.subr.bf16.mxu0 %v3027_v11  ;;  %v3032_v16 = vld [vmem:[%s3916_s3 + $0x10] sm:$0xff]   ;;  %v3033_v17 = vld [vmem:[%s3916_s3 + $0x8] sm:$0xff]   ;;  %v3034_v18 = vld [vmem:[%s3916_s3] sm:$0xff]   ;;  %v388_v22 = vshrl.u32 %v387_v19, 7  ;;  %s334_s22 = scalar_lea.vmem %s3922_s9, %s2404_s12 }
   0xe   : > { %v339_v1 = vld [vmem:[%s328_s15 + $0x10] sm:$0xff]  ;;  %v337_v2 = vld [vmem:[%s328_s15] sm:$0xff]  ;;  %v340_v3 = vld [vmem:[%s328_s15 + $0x18] sm:$0xff]  ;;  %2774 = vmatpush3.bf16.msra.mxu0 %v3027_v11 }
   0xf   : > { %359 = vperm.xlu1 %3017, %v339_v1   ;;  %349 = vperm.xlu0 %3016, %v337_v2   ;;  %v338_v4 = vld [vmem:[%s328_s15 + $0x8] sm:$0xff]  ;;  %v341_v7 = vld [vmem:[%s328_s15 + $0x20] sm:$0xff]  ;;  %v344_v8 = vld [vmem:[%s328_s15 + $0x38] sm:$0xff]  ;;  %v389_v24 = vsub.s32 0, %v388_v22  ;;  %v447_v26 = vsub.s32 1, %v388_v22  ;;  %v499_v28 = vsub.s32 2, %v388_v22 }
  0x10   : > { %v342_v9 = vld [vmem:[%s328_s15 + $0x28] sm:$0xff]  ;;  %v343_v10 = vld [vmem:[%s328_s15 + $0x30] sm:$0xff]  ;;  %2775 = vmatprep.subr.bf16.mxu0 %v3028_v12  ;;  %v345_v27 = vld [vmem:[%s3914_s1] sm:$0x7] }
  0x11   : > { %v3491_v29 = vrot.slane %v345_v27, %v389_v24  ;;  %v3493_v30 = vrot.slane %v345_v27, %v447_v26  ;;  %v3495_v32 = vrot.slane %v345_v27, %v499_v28  ;;  %v3501_v35 = vld [vmem:[%s3915_s2] ss:$0 sm:$0xff] }
  0x12   : > { %2776 = vmatpush3.bf16.msra.mxu0 %v3028_v12 }
  0x13   : > { %364 = vperm.xlu1 %3017, %v340_v3   ;;  %3020 = vset.pattern.permute.xlu0 %v3396_v5 }
  0x14   : > { %470 = vperm.xlu0 %3020, %v338_v4   ;;  %2777 = vmatprep.subr.bf16.mxu0 %v3029_v13 }
  0x16   : > { %2778 = vmatpush3.bf16.msra.mxu0 %v3029_v13 }
  0x17   : > { %3018 = vset.pattern.permute.xlu1 %v3397_v6  ;;  %2779 = vmatprep.subr.bf16.mxu0 %v3030_v14 }
  0x18   : > { %418 = vperm.xlu1 %3018, %v338_v4   ;;  %3021 = vset.pattern.permute.xlu0 %v3395_v0 }
  0x19   : > { %354 = vperm.xlu0 %3021, %v338_v4  }
  0x1a   : > { %2780 = vmatpush3.bf16.msra.mxu0 %v3030_v14 }
  0x1b   : > { %2781 = vmatprep.subr.bf16.mxu0 %v3031_v15 }
  0x1c   : > { %422 = vperm.xlu1 %3018, %v339_v1  }
  0x1d   : > { %369 = vperm.xlu0 %3021, %v341_v7  }
  0x1e   : > { %2782 = vmatpush3.bf16.msra.mxu0 %v3031_v15 }
  0x1f   : > { %2783 = vmatprep.subr.bf16.mxu0 %v3032_v16 }
  0x20   : > { %3019 = vset.pattern.permute.xlu1 %v3396_v5 }
  0x21   : > { %466 = vperm.xlu1 %3019, %v337_v2   ;;  %384 = vperm.xlu0 %3021, %v344_v8  }
  0x22   : > { %2784 = vmatpush3.bf16.msra.mxu0 %v3032_v16 }
  0x23   : > { %2785 = vmatprep.subr.bf16.mxu0 %v3033_v17 }
  0x25   : > { %474 = vperm.xlu1 %3019, %v339_v1   ;;  %3023 = vset.pattern.permute.xlu0 %v3397_v6 }
  0x26   : > { %414 = vperm.xlu0 %3023, %v337_v2   ;;  %2786 = vmatpush3.bf16.msra.mxu0 %v3033_v17 }
  0x27   : > { %2787 = vmatprep.subr.bf16.mxu0 %v3034_v18 }
  0x29   : > { %478 = vperm.xlu1 %3019, %v340_v3  }
  0x2a   : > { %426 = vperm.xlu0 %3023, %v340_v3   ;;  %2788 = vmatpush3.bf16.msra.mxu0 %v3034_v18 }
  0x2d   : > { %3022 = vset.pattern.permute.xlu1 %v3395_v0 }
  0x2e   : > { %374 = vperm.xlu1 %3022, %v342_v9   ;;  %434 = vperm.xlu0 %3023, %v342_v9  }
  0x32   : > { %379 = vperm.xlu1 %3022, %v343_v10   ;;  %3025 = vset.pattern.permute.xlu0 %v3396_v5 }
  0x33   : > { %482 = vperm.xlu0 %3025, %v341_v7  }
  0x36   : > { %3024 = vset.pattern.permute.xlu1 %v3397_v6 }
  0x37   : > { %430 = vperm.xlu1 %3024, %v341_v7   ;;  %494 = vperm.xlu0 %3025, %v344_v8  }
  0x3b   : > { %438 = vperm.xlu1 %3024, %v343_v10  }
  0x3f   : > { %442 = vperm.xlu1 %3024, %v344_v8  }
  0x43   : > { %3026 = vset.pattern.permute.xlu1 %v3396_v5 }
  0x44   : > { %486 = vperm.xlu1 %3026, %v342_v9  }
  0x48   : > { %490 = vperm.xlu1 %3026, %v343_v10  }
  0x8a   : > { %v360_v20 = vpop.permute.xlu1 %359  ;;  %v350_v21 = vpop.permute.xlu0 %349 }
  0x8b   : > { %v393_v42 = vmul.f32 %v3491_v29, %v360_v20  ;;  %v391_v47 = vmul.f32 %v3491_v29, %v350_v21 }
  0x8d   : > { %v407_v48 = vadd.f32 %v3501_v35, %v393_v42  ;;  %v405_v54 = vadd.f32 %v3501_v35, %v391_v47 }
  0x8e   : > { %v365_v23 = vpop.permute.xlu1 %364 }
  0x8f   : > { %v471_v25 = vpop.permute.xlu0 %470  ;;  %v394_v55 = vmul.f32 %v3491_v29, %v365_v23 }
  0x90   : > { %v502_v39 = vmul.f32 %v3495_v32, %v471_v25 }
  0x91   : > { %v408_v63 = vadd.f32 %v3501_v35, %v394_v55 }
  0x93   : > { %v419_v31 = vpop.permute.xlu1 %418 }
  0x94   : > { %v355_v33 = vpop.permute.xlu0 %354  ;;  %v450_v36 = vmul.f32 %v3493_v30, %v419_v31 }
  0x95   : > { %v392_v34 = vmul.f32 %v3491_v29, %v355_v33 }
  0x97   : > { %v406_v37 = vadd.f32 %v3501_v35, %v392_v34  ;;  %v423_v38 = vpop.permute.xlu1 %422 }
  0x98   : > { %v370_v40 = vpop.permute.xlu0 %369  ;;  %v451_v46 = vmul.f32 %v3493_v30, %v423_v38 }
  0x99   : > { %v458_v41 = vadd.f32 %v450_v36, %v406_v37  ;;  %v395_v10 = vmul.f32 %v3491_v29, %v370_v40 }
  0x9a   : > { %v459_v51 = vadd.f32 %v451_v46, %v407_v48 }
  0x9b   : > { %v3507_v45 = vadd.f32 %v502_v39, %v458_v41  ;;  %v409_v14 = vadd.f32 %v3501_v35, %v395_v10 }
  0x9c   : > { %v467_v43 = vpop.permute.xlu1 %466  ;;  %v385_v44 = vpop.permute.xlu0 %384 }
  0x9d   : > { %v2409_v50 = vmul.f32 -1.442695, %v3507_v45  ;;  %v501_v58 = vmul.f32 %v3495_v32, %v467_v43  ;;  %v398_v22 = vmul.f32 %v3491_v29, %v385_v44 }
  0x9f   : > { %3099 = vpow2.f32 %v2409_v50  ;;  %v412_v33 = vadd.f32 %v3501_v35, %v398_v22  ;;  %v3040_v22 = vld [vmem:[%s3918_s5 + $0x10] sm:$0xff]  }
  0xa0   : > { %v475_v49 = vpop.permute.xlu1 %474 }
  0xa1   : > { %v503_v52 = vmul.f32 %v3495_v32, %v475_v49  ;;  %v415_v53 = vpop.permute.xlu0 %414 }
  0xa2   : > { %v449_v56 = vmul.f32 %v3493_v30, %v415_v53 }
  0xa3   : > { %v3517_v57 = vadd.f32 %v503_v52, %v459_v51 }
  0xa4   : > { %v457_v59 = vadd.f32 %v449_v56, %v405_v54  ;;  %v479_v60 = vpop.permute.xlu1 %478 }
  0xa5   : > { %v2410_v61 = vmul.f32 -1.442695, %v3517_v57  ;;  %v427_v62 = vpop.permute.xlu0 %426  ;;  %v504_v2 = vmul.f32 %v3495_v32, %v479_v60 }
  0xa6   : > { %v452_v0 = vmul.f32 %v3493_v30, %v427_v62  ;;  %v3523_v1 = vadd.f32 %v501_v58, %v457_v59 }
  0xa7   : > { %3101 = vpow2.f32 %v2410_v61 }
  0xa8   : > { %v460_v3 = vadd.f32 %v452_v0, %v408_v63  ;;  %v2408_v4 = vmul.f32 -1.442695, %v3523_v1 }
  0xa9   : > { %v375_v5 = vpop.permute.xlu1 %374  ;;  %v435_v8 = vpop.permute.xlu0 %434 }
  0xaa   : > { %v3527_v6 = vadd.f32 %v504_v2, %v460_v3  ;;  %3103 = vpow2.f32 %v2408_v4  ;;  %v396_v23 = vmul.f32 %v3491_v29, %v375_v5  ;;  %v454_v34 = vmul.f32 %v3493_v30, %v435_v8 }
  0xac   : > { %v2411_v7 = vmul.f32 -1.442695, %v3527_v6  ;;  %v3100_v11 = vpop.eup %3099  ;;  %v410_v39 = vadd.f32 %v3501_v35, %v396_v23  ;;  %v3041_v23 = vld [vmem:[%s3918_s5 + $0x8] sm:$0xff]  }
  0xad   : > { %v380_v9 = vpop.permute.xlu1 %379  ;;  %v542_v17 = vadd.f32 1.0, %v3100_v11 }
  0xae   : > { %3105 = vpow2.f32 %v2411_v7  ;;  %v483_v12 = vpop.permute.xlu0 %482  ;;  %v397_v42 = vmul.f32 %v3491_v29, %v380_v9  ;;  %v462_v46 = vadd.f32 %v454_v34, %v410_v39 }
  0xaf   : > { %v505_v16 = vmul.f32 %v3495_v32, %v483_v12  ;;  %3107 = vrcp.f32 %v542_v17  ;;  %v3035_v17 = vld [vmem:[%s3918_s5 + $0x38] sm:$0xff]  }
  0xb0   : > { %v411_v50 = vadd.f32 %v3501_v35, %v397_v42  ;;  %2797 = vmatprep.subr.bf16.mxu1 %v3035_v17 }
  0xb1   : > { %2798 = vmatpush3.bf16.msra.mxu1 %v3035_v17 }
  0xb2   : > { %v431_v13 = vpop.permute.xlu1 %430  ;;  %v495_v26 = vpop.permute.xlu0 %494 }
  0xb3   : > { %v453_v15 = vmul.f32 %v3493_v30, %v431_v13  ;;  %v508_v37 = vmul.f32 %v3495_v32, %v495_v26 }
  0xb4   : > { %v3102_v18 = vpop.eup %3101 }
  0xb5   : > { %v461_v19 = vadd.f32 %v453_v15, %v409_v14  ;;  %v543_v24 = vadd.f32 1.0, %v3102_v18  ;;  %v3036_v18 = vld [vmem:[%s3918_s5 + $0x30] sm:$0xff]  }
  0xb6   : > { %v439_v20 = vpop.permute.xlu1 %438  ;;  %2799 = vmatprep.subr.bf16.mxu1 %v3036_v18 }
  0xb7   : > { %v3104_v21 = vpop.eup %3103  ;;  %v513_v25 = vadd.f32 %v505_v16, %v461_v19  ;;  %v455_v47 = vmul.f32 %v3493_v30, %v439_v20  ;;  %2800 = vmatpush3.bf16.msra.mxu1 %v3036_v18  ;;  %v3037_v19 = vld [vmem:[%s3918_s5 + $0x28] sm:$0xff]   ;;  %v3038_v20 = vld [vmem:[%s3918_s5 + $0x20] sm:$0xff]  }
  0xb8   : > { %v541_v27 = vadd.f32 1.0, %v3104_v21  ;;  %2801 = vmatprep.subr.bf16.mxu1 %v3037_v19  ;;  %v3039_v21 = vld [vmem:[%s3918_s5 + $0x18] sm:$0xff]  }
  0xb9   : > { %v2412_v40 = vmul.f32 -1.442695, %v513_v25  ;;  %v463_v53 = vadd.f32 %v455_v47, %v411_v50 }
  0xba   : > { %v443_v28 = vpop.permute.xlu1 %442  ;;  %3109 = vrcp.f32 %v541_v27 }
  0xbb   : > { %v3106_v31 = vpop.eup %3105  ;;  %v456_v36 = vmul.f32 %v3493_v30, %v443_v28  ;;  %3111 = vrcp.f32 %v543_v24  ;;  %2802 = vmatpush3.bf16.msra.mxu1 %v3037_v19  ;;  %v3042_v24 = vld [vmem:[%s3918_s5] sm:$0xff]  }
  0xbc   : > { %v544_v38 = vadd.f32 1.0, %v3106_v31  ;;  %v3108_v56 = vpop.eup %3107  ;;  %2803 = vmatprep.subr.bf16.mxu1 %v3038_v20 }
  0xbd   : > { %v464_v41 = vadd.f32 %v456_v36, %v412_v33  ;;  %v3550_v30 = vmul.f32 %v3108_v56, %v3507_v45 }
  0xbe   : > { %3113 = vrcp.f32 %v544_v38 }
  0xbf   : > { %v516_v43 = vadd.f32 %v508_v37, %v464_v41  ;;  %v487_v44 = vpop.permute.xlu1 %486  ;;  %3115 = vpow2.f32 %v2412_v40  ;;  %2804 = vmatpush3.bf16.msra.mxu1 %v3038_v20 }
  0xc0   : > { %v506_v48 = vmul.f32 %v3495_v32, %v487_v44  ;;  %2805 = vmatprep.subr.bf16.mxu1 %v3039_v21 }
  0xc1   : > { %v2415_v49 = vmul.f32 -1.442695, %v516_v43 }
  0xc2   : > { %v514_v51 = vadd.f32 %v506_v48, %v462_v46 }
  0xc3   : > { %v491_v52 = vpop.permute.xlu1 %490  ;;  %3117 = vpow2.f32 %v2415_v49  ;;  %2806 = vmatpush3.bf16.msra.mxu1 %v3039_v21 }
  0xc4   : > { %v2413_v54 = vmul.f32 -1.442695, %v514_v51  ;;  %v507_v55 = vmul.f32 %v3495_v32, %v491_v52  ;;  %2807 = vmatprep.subr.bf16.mxu1 %v3040_v22 }
  0xc6   : > { %3119 = vpow2.f32 %v2413_v54  ;;  %v515_v29 = vadd.f32 %v507_v55, %v463_v53 }
  0xc7   : > { %v3110_v58 = vpop.eup %3109  ;;  %2808 = vmatpush3.bf16.msra.mxu1 %v3040_v22 }
  0xc8   : > { %v2414_v59 = vmul.f32 -1.442695, %v515_v29  ;;  %v3547_v60 = vmul.f32 %v3110_v58, %v3523_v1  ;;  %v3112_v61 = vpop.eup %3111  ;;  %2809 = vmatprep.subr.bf16.mxu1 %v3041_v23 }
  0xc9   : > { %v3555_v63 = vmul.f32 %v3112_v61, %v3517_v57 }
  0xca   : > { %3121 = vpow2.f32 %v2414_v59  ;;  %v573_v35 = vpack.c.bf16 %v3550_v30, %v3547_v60 }
  0xcb   : > { %v3114_v62 = vpop.eup %3113  ;;  %2810 = vmatpush3.bf16.msra.mxu1 %v3041_v23 }
  0xcc   : > { %2789 = vmatprep.mubr.bf16.mxu0 %v573_v35  ;;  %v3558_v32 = vmul.f32 %v3114_v62, %v3527_v6  ;;  %v3116_v0 = vpop.eup %3115  ;;  %2811 = vmatprep.subr.bf16.mxu1 %v3042_v24 }
  0xcd   : > { %v545_v2 = vadd.f32 1.0, %v3116_v0 }
  0xce   : > { %v574_v1 = vpack.c.bf16 %v3558_v32, %v3555_v63 }
  0xcf   : > { %3123 = vrcp.f32 %v545_v2  ;;  %2812 = vmatpush3.bf16.msra.mxu1 %v3042_v24 }
  0xd0   : > { %2790 = vmatmul.mubr.bf16.vlgmr.msra.gmra.mxu0 %v574_v1  ;;  %v3118_v45 = vpop.eup %3117 }
  0xd1   : > { %v548_v4 = vadd.f32 1.0, %v3118_v45 }
  0xd3   : > { %v3120_v3 = vpop.eup %3119 }
  0xd4   : > { %v546_v5 = vadd.f32 1.0, %v3120_v3 }
  0xd6   : > { %3125 = vrcp.f32 %v546_v5 }
  0xd7   : > { %v3122_v7 = vpop.eup %3121  ;;  %3127 = vrcp.f32 %v548_v4 }
  0xd8   : > { %v547_v57 = vadd.f32 1.0, %v3122_v7 }
  0xda   : > { %3129 = vrcp.f32 %v547_v57 }
  0xdc   : > { %v3124_v8 = vpop.eup %3123 }
  0xdd   : > { %v3562_v6 = vmul.f32 %v3124_v8, %v513_v25  ;;  %v2416_v25 = vld [vmem:[%s3917_s4] ss:$0 sm:$0xff] }
  0xe3   : > { %v3126_v9 = vpop.eup %3125 }
  0xe4   : > { %v3564_v10 = vmul.f32 %v3126_v9, %v514_v51  ;;  %v3128_v11 = vpop.eup %3127 }
  0xe5   : > { %v3568_v14 = vmul.f32 %v3128_v11, %v516_v43 }
  0xe6   : > { %v575_v12 = vpack.c.bf16 %v3564_v10, %v3562_v6 }
  0xe7   : > { %v3130_v13 = vpop.eup %3129 }
  0xe8   : > { %v3570_v15 = vmul.f32 %v3130_v13, %v515_v29  ;;  %2793 = vmatprep.mubr.bf16.mxu0 %v575_v12 }
  0xea   : > { %v576_v16 = vpack.c.bf16 %v3568_v14, %v3570_v15 }
  0xec   : > { %2794 = vmatmul.mubr.bf16.gmra.mxu0 %v576_v16 }
 0x190   : > { %v2791_v26 = vpop.f32.mrf.mxu0 }
 0x191   : > { %v691_v27 = vadd.f32 %v2791_v26, %v2416_v25 }
 0x192   : > { %v682_v28 = vpop.f32.mrf.mxu0 }
 0x193   : > { %v2427_v31 = vmul.f32 -1.442695, %v691_v27  ;;  %v683_v33 = vadd.f32 %v2416_v25, %v682_v28 }
 0x194   : > { %v2792_v34 = vpop.f32.mrf.mxu0 }
 0x195   : > { %v2425_v36 = vmul.f32 -1.442695, %v683_v33  ;;  %v694_v37 = vadd.f32 %v2792_v34, %v2416_v25  ;;  %3131 = vpow2.f32 %v2427_v31  ;;  %v3044_v34 = vld [vmem:[%s3916_s3 + $0x70] sm:$0xff]  }
 0x196   : > { %v685_v38 = vpop.f32.mrf.mxu0 }
 0x197   : > { %3133 = vpow2.f32 %v2425_v36  ;;  %v2428_v39 = vmul.f32 -1.442695, %v694_v37  ;;  %v686_v40 = vadd.f32 %v2416_v25, %v685_v38  ;;  %v3045_v36 = vld [vmem:[%s3916_s3 + $0x68] sm:$0xff]   ;;  %v3047_v38 = vld [vmem:[%s3916_s3 + $0x58] sm:$0xff]  }
 0x199   : > { %3135 = vpow2.f32 %v2428_v39  ;;  %v2426_v41 = vmul.f32 -1.442695, %v686_v40  ;;  %v3048_v39 = vld [vmem:[%s3916_s3 + $0x50] sm:$0xff]  }
 0x19b   : > { %3137 = vpow2.f32 %v2426_v41  ;;  %v3050_v41 = vld [vmem:[%s3916_s3 + $0x40] sm:$0xff]  }
 0x1a2   : > { %v3132_v42 = vpop.eup %3131 }
 0x1a3   : > { %v739_v47 = vadd.f32 1.0, %v3132_v42  ;;  %v2433_v42 = vld [vmem:[%s3919_s6] ss:$0 sm:$0xff] }
 0x1a4   : > { %v3134_v43 = vpop.eup %3133 }
 0x1a5   : > { %v737_v44 = vadd.f32 1.0, %v3134_v43 }
 0x1a6   : > { %v3136_v46 = vpop.eup %3135 }
 0x1a7   : > { %v740_v48 = vadd.f32 1.0, %v3136_v46  ;;  %3139 = vrcp.f32 %v737_v44 }
 0x1a8   : > { %v3138_v49 = vpop.eup %3137 }
 0x1a9   : > { %3141 = vrcp.f32 %v740_v48  ;;  %v738_v50 = vadd.f32 1.0, %v3138_v49 }
 0x1aa   : > { %3143 = vrcp.f32 %v739_v47 }
 0x1ab   : > { %3145 = vrcp.f32 %v738_v50 }
 0x1ac   : > { %v2795_v51 = vpop.f32.mrf.mxu0 }
 0x1ad   : > { %v707_v52 = vadd.f32 %v2795_v51, %v2416_v25 }
 0x1ae   : > { %v698_v53 = vpop.f32.mrf.mxu0 }
 0x1af   : > { %v2431_v54 = vmul.f32 -1.442695, %v707_v52  ;;  %v699_v55 = vadd.f32 %v2416_v25, %v698_v53 }
 0x1b0   : > { %v2796_v56 = vpop.f32.mrf.mxu0 }
 0x1b1   : > { %v2429_v29 = vmul.f32 -1.442695, %v699_v55  ;;  %v710_v58 = vadd.f32 %v2796_v56, %v2416_v25  ;;  %3147 = vpow2.f32 %v2431_v54 }
 0x1b2   : > { %v701_v59 = vpop.f32.mrf.mxu0 }
 0x1b3   : > { %3149 = vpow2.f32 %v2429_v29  ;;  %v2432_v61 = vmul.f32 -1.442695, %v710_v58  ;;  %v702_v35 = vadd.f32 %v2416_v25, %v701_v59 }
 0x1b4   : > { %v3140_v62 = vpop.eup %3139 }
 0x1b5   : > { %3151 = vpow2.f32 %v2432_v61  ;;  %v2430_v0 = vmul.f32 -1.442695, %v702_v35  ;;  %v761_v4 = vmul.f32 %v3140_v62, %v683_v33  ;;  %v3043_v33 = vld [vmem:[%s3916_s3 + $0x78] sm:$0xff]  }
 0x1b6   : > { %v3142_v1 = vpop.eup %3141  ;;  %2821 = vmatprep.subr.bf16.mxu0 %v3043_v33 }
 0x1b7   : > { %v3144_v2 = vpop.eup %3143  ;;  %3153 = vpow2.f32 %v2430_v0  ;;  %v764_v3 = vmul.f32 %v3142_v1, %v694_v37  ;;  %2822 = vmatpush3.bf16.msra.mxu0 %v3043_v33  ;;  %v3046_v37 = vld [vmem:[%s3916_s3 + $0x60] sm:$0xff]  }
 0x1b8   : > { %v3146_v45 = vpop.eup %3145  ;;  %v763_v7 = vmul.f32 %v3144_v2, %v691_v27  ;;  %2823 = vmatprep.subr.bf16.mxu0 %v3044_v34 }
 0x1b9   : > { %v762_v5 = vmul.f32 %v3146_v45, %v686_v40  ;;  %v3049_v40 = vld [vmem:[%s3916_s3 + $0x48] sm:$0xff]  }
 0x1ba   : > { %v770_v8 = vpack.c.bf16 %v764_v3, %v763_v7 }
 0x1bb   : > { %v769_v57 = vpack.c.bf16 %v762_v5, %v761_v4  ;;  %2824 = vmatpush3.bf16.msra.mxu0 %v3044_v34 }
 0x1bc   : > { %2825 = vmatprep.subr.bf16.mxu0 %v3045_v36 }
 0x1bd   : > { %2813 = vmatprep.mubr.bf16.mxu1 %v769_v57 }
 0x1be   : > { %2814 = vmatmul.mubr.bf16.vlgmr.msra.gmra.mxu1 %v770_v8  ;;  %v3148_v9 = vpop.eup %3147 }
 0x1bf   : > { %v743_v16 = vadd.f32 1.0, %v3148_v9  ;;  %2826 = vmatpush3.bf16.msra.mxu0 %v3045_v36 }
 0x1c0   : > { %v3150_v11 = vpop.eup %3149  ;;  %2827 = vmatprep.subr.bf16.mxu0 %v3046_v37 }
 0x1c1   : > { %v741_v12 = vadd.f32 1.0, %v3150_v11 }
 0x1c2   : > { %v3152_v13 = vpop.eup %3151 }
 0x1c3   : > { %v744_v17 = vadd.f32 1.0, %v3152_v13  ;;  %3155 = vrcp.f32 %v741_v12  ;;  %2828 = vmatpush3.bf16.msra.mxu0 %v3046_v37 }
 0x1c4   : > { %v3154_v18 = vpop.eup %3153  ;;  %2829 = vmatprep.subr.bf16.mxu0 %v3047_v38 }
 0x1c5   : > { %3157 = vrcp.f32 %v744_v17  ;;  %v742_v19 = vadd.f32 1.0, %v3154_v18 }
 0x1c6   : > { %3159 = vrcp.f32 %v743_v16 }
 0x1c7   : > { %3161 = vrcp.f32 %v742_v19  ;;  %2830 = vmatpush3.bf16.msra.mxu0 %v3047_v38 }
 0x1c8   : > { %2831 = vmatprep.subr.bf16.mxu0 %v3048_v39 }
 0x1cb   : > { %2832 = vmatpush3.bf16.msra.mxu0 %v3048_v39 }
 0x1cc   : > { %2833 = vmatprep.subr.bf16.mxu0 %v3049_v40 }
 0x1cf   : > { %2834 = vmatpush3.bf16.msra.mxu0 %v3049_v40 }
 0x1d0   : > { %v3156_v20 = vpop.eup %3155  ;;  %2835 = vmatprep.subr.bf16.mxu0 %v3050_v41 }
 0x1d1   : > { %v765_v25 = vmul.f32 %v3156_v20, %v699_v55 }
 0x1d2   : > { %v3158_v21 = vpop.eup %3157 }
 0x1d3   : > { %v3160_v22 = vpop.eup %3159  ;;  %v768_v24 = vmul.f32 %v3158_v21, %v710_v58  ;;  %2836 = vmatpush3.bf16.msra.mxu0 %v3050_v41 }
 0x1d4   : > { %v3162_v23 = vpop.eup %3161  ;;  %v767_v27 = vmul.f32 %v3160_v22, %v707_v52 }
 0x1d5   : > { %v766_v26 = vmul.f32 %v3162_v23, %v702_v35 }
 0x1d6   : > { %v772_v31 = vpack.c.bf16 %v768_v24, %v767_v27 }
 0x1d7   : > { %v771_v28 = vpack.c.bf16 %v766_v26, %v765_v25 }
 0x1d9   : > { %2817 = vmatprep.mubr.bf16.mxu1 %v771_v28 }
 0x1da   : > { %2818 = vmatmul.mubr.bf16.gmra.mxu1 %v772_v31 }
 0x27e   : > { %v2815_v43 = vpop.f32.mrf.mxu1 }
 0x27f   : > { %v887_v44 = vadd.f32 %v2815_v43, %v2433_v42 }
 0x280   : > { %v878_v46 = vpop.f32.mrf.mxu1 }
 0x281   : > { %v911_v47 = vadd.f32 %v887_v44, %v3555_v63  ;;  %v879_v48 = vadd.f32 %v2433_v42, %v878_v46 }
 0x282   : > { %v2816_v49 = vpop.f32.mrf.mxu1 }
 0x283   : > { %v2444_v50 = vmul.f32 -1.442695, %v911_v47  ;;  %v909_v51 = vadd.f32 %v879_v48, %v3547_v60  ;;  %v890_v52 = vadd.f32 %v2816_v49, %v2433_v42  ;;  %v3051_v48 = vld [vmem:[%s3918_s5 + $0x78] sm:$0xff]   ;;  %v3052_v49 = vld [vmem:[%s3918_s5 + $0x70] sm:$0xff]  }
 0x284   : > { %v881_v53 = vpop.f32.mrf.mxu1  ;;  %2845 = vmatprep.subr.bf16.mxu1 %v3051_v48 }
 0x285   : > { %v2442_v54 = vmul.f32 -1.442695, %v909_v51  ;;  %v912_v55 = vadd.f32 %v890_v52, %v3558_v32  ;;  %v882_v56 = vadd.f32 %v2433_v42, %v881_v53  ;;  %3163 = vpow2.f32 %v2444_v50  ;;  %2846 = vmatpush3.bf16.msra.mxu1 %v3051_v48  ;;  %v3053_v50 = vld [vmem:[%s3918_s5 + $0x68] sm:$0xff]   ;;  %v3055_v52 = vld [vmem:[%s3918_s5 + $0x58] sm:$0xff]   ;;  %v3056_v53 = vld [vmem:[%s3918_s5 + $0x50] sm:$0xff]  }
 0x286   : > { %2847 = vmatprep.subr.bf16.mxu1 %v3052_v49 }
 0x287   : > { %3165 = vpow2.f32 %v2442_v54  ;;  %v2445_v29 = vmul.f32 -1.442695, %v912_v55  ;;  %v910_v58 = vadd.f32 %v882_v56, %v3550_v30  ;;  %v3057_v54 = vld [vmem:[%s3918_s5 + $0x48] sm:$0xff]   ;;  %v2467_v56 = vld [vmem:[%s3917_s4 + $0x1] ss:$0 sm:$0xff] }
 0x289   : > { %3167 = vpow2.f32 %v2445_v29  ;;  %v2443_v59 = vmul.f32 -1.442695, %v910_v58  ;;  %2848 = vmatpush3.bf16.msra.mxu1 %v3052_v49 }
 0x28a   : > { %2849 = vmatprep.subr.bf16.mxu1 %v3053_v50 }
 0x28b   : > { %3169 = vpow2.f32 %v2443_v59 }
 0x28d   : > { %2850 = vmatpush3.bf16.msra.mxu1 %v3053_v50 }
 0x292   : > { %v3164_v63 = vpop.eup %3163 }
 0x293   : > { %v943_v0 = vadd.f32 1.0, %v3164_v63 }
 0x294   : > { %v3166_v61 = vpop.eup %3165 }
 0x295   : > { %v941_v35 = vadd.f32 1.0, %v3166_v61 }
 0x296   : > { %v3168_v62 = vpop.eup %3167 }
 0x297   : > { %v944_v60 = vadd.f32 1.0, %v3168_v62  ;;  %3171 = vrcp.f32 %v941_v35 }
 0x298   : > { %v3170_v1 = vpop.eup %3169 }
 0x299   : > { %3173 = vrcp.f32 %v944_v60  ;;  %v942_v2 = vadd.f32 1.0, %v3170_v1 }
 0x29a   : > { %3175 = vrcp.f32 %v943_v0  ;;  %v2819_v32 = vpop.f32.mrf.mxu1 }
 0x29b   : > { %3177 = vrcp.f32 %v942_v2  ;;  %v903_v45 = vadd.f32 %v2819_v32, %v2433_v42 }
 0x29c   : > { %v894_v3 = vpop.f32.mrf.mxu1 }
 0x29d   : > { %v915_v30 = vadd.f32 %v903_v45, %v3570_v15  ;;  %v895_v4 = vadd.f32 %v2433_v42, %v894_v3 }
 0x29e   : > { %v2820_v5 = vpop.f32.mrf.mxu1 }
 0x29f   : > { %v2448_v7 = vmul.f32 -1.442695, %v915_v30  ;;  %v913_v57 = vadd.f32 %v895_v4, %v3562_v6  ;;  %v906_v8 = vadd.f32 %v2820_v5, %v2433_v42 }
 0x2a0   : > { %v897_v9 = vpop.f32.mrf.mxu1 }
 0x2a1   : > { %v2446_v11 = vmul.f32 -1.442695, %v913_v57  ;;  %v916_v12 = vadd.f32 %v906_v8, %v3568_v14  ;;  %v898_v13 = vadd.f32 %v2433_v42, %v897_v9  ;;  %3179 = vpow2.f32 %v2448_v7 }
 0x2a3   : > { %3181 = vpow2.f32 %v2446_v11  ;;  %v2449_v16 = vmul.f32 -1.442695, %v916_v12  ;;  %v914_v17 = vadd.f32 %v898_v13, %v3564_v10 }
 0x2a4   : > { %v3172_v18 = vpop.eup %3171 }
 0x2a5   : > { %3183 = vpow2.f32 %v2449_v16  ;;  %v2447_v19 = vmul.f32 -1.442695, %v914_v17  ;;  %v3638_v6 = vmul.f32 %v3172_v18, %v909_v51  ;;  %v3054_v51 = vld [vmem:[%s3918_s5 + $0x60] sm:$0xff]  }
 0x2a6   : > { %v3174_v15 = vpop.eup %3173  ;;  %2851 = vmatprep.subr.bf16.mxu1 %v3054_v51 }
 0x2a7   : > { %v3176_v20 = vpop.eup %3175  ;;  %3185 = vpow2.f32 %v2447_v19  ;;  %v3636_v22 = vmul.f32 %v3174_v15, %v912_v55  ;;  %2852 = vmatpush3.bf16.msra.mxu1 %v3054_v51  ;;  %v3058_v55 = vld [vmem:[%s3918_s5 + $0x40] sm:$0xff]  }
 0x2a8   : > { %v3178_v21 = vpop.eup %3177  ;;  %v3642_v14 = vmul.f32 %v3176_v20, %v911_v47  ;;  %2853 = vmatprep.subr.bf16.mxu1 %v3055_v52 }
 0x2a9   : > { %v3640_v23 = vmul.f32 %v3178_v21, %v910_v58 }
 0x2aa   : > { %v974_v10 = vpack.c.bf16 %v3636_v22, %v3642_v14 }
 0x2ab   : > { %v973_v24 = vpack.c.bf16 %v3640_v23, %v3638_v6  ;;  %2854 = vmatpush3.bf16.msra.mxu1 %v3055_v52 }
 0x2ac   : > { %2855 = vmatprep.subr.bf16.mxu1 %v3056_v53 }
 0x2ad   : > { %2837 = vmatprep.mubr.bf16.mxu0 %v973_v24 }
 0x2ae   : > { %2838 = vmatmul.mubr.bf16.vlgmr.msra.gmra.mxu0 %v974_v10  ;;  %v3180_v25 = vpop.eup %3179 }
 0x2af   : > { %v947_v31 = vadd.f32 1.0, %v3180_v25  ;;  %2856 = vmatpush3.bf16.msra.mxu1 %v3056_v53 }
 0x2b0   : > { %v3182_v26 = vpop.eup %3181  ;;  %2857 = vmatprep.subr.bf16.mxu1 %v3057_v54 }
 0x2b1   : > { %v945_v27 = vadd.f32 1.0, %v3182_v26 }
 0x2b2   : > { %v3184_v28 = vpop.eup %3183 }
 0x2b3   : > { %v948_v33 = vadd.f32 1.0, %v3184_v28  ;;  %3187 = vrcp.f32 %v945_v27  ;;  %2858 = vmatpush3.bf16.msra.mxu1 %v3057_v54 }
 0x2b4   : > { %v3186_v34 = vpop.eup %3185  ;;  %2859 = vmatprep.subr.bf16.mxu1 %v3058_v55 }
 0x2b5   : > { %3189 = vrcp.f32 %v948_v33  ;;  %v946_v36 = vadd.f32 1.0, %v3186_v34 }
 0x2b6   : > { %3191 = vrcp.f32 %v947_v31 }
 0x2b7   : > { %3193 = vrcp.f32 %v946_v36  ;;  %2860 = vmatpush3.bf16.msra.mxu1 %v3058_v55 }
 0x2c0   : > { %v3188_v37 = vpop.eup %3187 }
 0x2c1   : > { %v3650_v42 = vmul.f32 %v3188_v37, %v913_v57 }
 0x2c2   : > { %v3190_v38 = vpop.eup %3189 }
 0x2c3   : > { %v3192_v39 = vpop.eup %3191  ;;  %v3648_v41 = vmul.f32 %v3190_v38, %v916_v12 }
 0x2c4   : > { %v3194_v40 = vpop.eup %3193  ;;  %v3654_v44 = vmul.f32 %v3192_v39, %v915_v30 }
 0x2c5   : > { %v3652_v43 = vmul.f32 %v3194_v40, %v914_v17 }
 0x2c6   : > { %v976_v47 = vpack.c.bf16 %v3648_v41, %v3654_v44 }
 0x2c7   : > { %v975_v46 = vpack.c.bf16 %v3652_v43, %v3650_v42 }
 0x2c9   : > { %2841 = vmatprep.mubr.bf16.mxu0 %v975_v46 }
 0x2ca   : > { %2842 = vmatmul.mubr.bf16.gmra.mxu0 %v976_v47 }
 0x36e   : > { %v2839_v29 = vpop.f32.mrf.mxu0 }
 0x36f   : > { %v1093_v58 = vadd.f32 %v2839_v29, %v2467_v56 }
 0x370   : > { %v1084_v59 = vpop.f32.mrf.mxu0 }
 0x371   : > { %v2478_v63 = vmul.f32 -1.442695, %v1093_v58  ;;  %v1085_v61 = vadd.f32 %v2467_v56, %v1084_v59 }
 0x372   : > { %v2840_v35 = vpop.f32.mrf.mxu0 }
 0x373   : > { %v2476_v62 = vmul.f32 -1.442695, %v1085_v61  ;;  %v1096_v0 = vadd.f32 %v2840_v35, %v2467_v56  ;;  %3195 = vpow2.f32 %v2478_v63  ;;  %v3060_v35 = vld [vmem:[%s3916_s3 + $0xb0] sm:$0xff]  }
 0x374   : > { %v1087_v60 = vpop.f32.mrf.mxu0 }
 0x375   : > { %3197 = vpow2.f32 %v2476_v62  ;;  %v2479_v1 = vmul.f32 -1.442695, %v1096_v0  ;;  %v1088_v2 = vadd.f32 %v2467_v56, %v1087_v60  ;;  %v3061_v62 = vld [vmem:[%s3916_s3 + $0xa8] sm:$0xff]   ;;  %v3063_v60 = vld [vmem:[%s3916_s3 + $0x98] sm:$0xff]  }
 0x377   : > { %3199 = vpow2.f32 %v2479_v1  ;;  %v2477_v32 = vmul.f32 -1.442695, %v1088_v2  ;;  %v3064_v1 = vld [vmem:[%s3916_s3 + $0x90] sm:$0xff]  }
 0x379   : > { %3201 = vpow2.f32 %v2477_v32  ;;  %v3066_v32 = vld [vmem:[%s3916_s3 + $0x80] sm:$0xff]  }
 0x380   : > { %v3196_v45 = vpop.eup %3195 }
 0x381   : > { %v1141_v5 = vadd.f32 1.0, %v3196_v45  ;;  %v2501_v45 = vld [vmem:[%s3919_s6 + $0x1] ss:$0 sm:$0xff] }
 0x382   : > { %v3198_v3 = vpop.eup %3197 }
 0x383   : > { %v1139_v30 = vadd.f32 1.0, %v3198_v3 }
 0x384   : > { %v3200_v4 = vpop.eup %3199 }
 0x385   : > { %v1142_v7 = vadd.f32 1.0, %v3200_v4  ;;  %3203 = vrcp.f32 %v1139_v30 }
 0x386   : > { %v3202_v57 = vpop.eup %3201 }
 0x387   : > { %3205 = vrcp.f32 %v1142_v7  ;;  %v1140_v8 = vadd.f32 1.0, %v3202_v57 }
 0x388   : > { %3207 = vrcp.f32 %v1141_v5 }
 0x389   : > { %3209 = vrcp.f32 %v1140_v8 }
 0x38a   : > { %v2843_v9 = vpop.f32.mrf.mxu0 }
 0x38b   : > { %v1109_v11 = vadd.f32 %v2843_v9, %v2467_v56 }
 0x38c   : > { %v1100_v12 = vpop.f32.mrf.mxu0 }
 0x38d   : > { %v2482_v13 = vmul.f32 -1.442695, %v1109_v11  ;;  %v1101_v16 = vadd.f32 %v2467_v56, %v1100_v12 }
 0x38e   : > { %v2844_v17 = vpop.f32.mrf.mxu0 }
 0x38f   : > { %v2480_v18 = vmul.f32 -1.442695, %v1101_v16  ;;  %v1112_v19 = vadd.f32 %v2844_v17, %v2467_v56  ;;  %3211 = vpow2.f32 %v2482_v13 }
 0x390   : > { %v1103_v15 = vpop.f32.mrf.mxu0 }
 0x391   : > { %3213 = vpow2.f32 %v2480_v18  ;;  %v2483_v20 = vmul.f32 -1.442695, %v1112_v19  ;;  %v1104_v21 = vadd.f32 %v2467_v56, %v1103_v15 }
 0x392   : > { %v3204_v24 = vpop.eup %3203 }
 0x393   : > { %3215 = vpow2.f32 %v2483_v20  ;;  %v2481_v10 = vmul.f32 -1.442695, %v1104_v21  ;;  %v1163_v31 = vmul.f32 %v3204_v24, %v1085_v61  ;;  %v3059_v61 = vld [vmem:[%s3916_s3 + $0xb8] sm:$0xff]  }
 0x394   : > { %v3206_v25 = vpop.eup %3205  ;;  %2869 = vmatprep.subr.bf16.mxu0 %v3059_v61 }
 0x395   : > { %v3208_v26 = vpop.eup %3207  ;;  %3217 = vpow2.f32 %v2481_v10  ;;  %v1166_v28 = vmul.f32 %v3206_v25, %v1096_v0  ;;  %2870 = vmatpush3.bf16.msra.mxu0 %v3059_v61  ;;  %v3062_v0 = vld [vmem:[%s3916_s3 + $0xa0] sm:$0xff]  }
 0x396   : > { %v3210_v27 = vpop.eup %3209  ;;  %v1165_v34 = vmul.f32 %v3208_v26, %v1093_v58  ;;  %2871 = vmatprep.subr.bf16.mxu0 %v3060_v35 }
 0x397   : > { %v1164_v33 = vmul.f32 %v3210_v27, %v1088_v2  ;;  %v3065_v2 = vld [vmem:[%s3916_s3 + $0x88] sm:$0xff]  }
 0x398   : > { %v1172_v37 = vpack.c.bf16 %v1166_v28, %v1165_v34 }
 0x399   : > { %v1171_v36 = vpack.c.bf16 %v1164_v33, %v1163_v31  ;;  %2872 = vmatpush3.bf16.msra.mxu0 %v3060_v35 }
 0x39a   : > { %2873 = vmatprep.subr.bf16.mxu0 %v3061_v62 }
 0x39b   : > { %2861 = vmatprep.mubr.bf16.mxu1 %v1171_v36 }
 0x39c   : > { %2862 = vmatmul.mubr.bf16.vlgmr.msra.gmra.mxu1 %v1172_v37  ;;  %v3212_v38 = vpop.eup %3211 }
 0x39d   : > { %v1145_v47 = vadd.f32 1.0, %v3212_v38  ;;  %2874 = vmatpush3.bf16.msra.mxu0 %v3061_v62 }
 0x39e   : > { %v3214_v39 = vpop.eup %3213  ;;  %2875 = vmatprep.subr.bf16.mxu0 %v3062_v0 }
 0x39f   : > { %v1143_v40 = vadd.f32 1.0, %v3214_v39 }
 0x3a0   : > { %v3216_v46 = vpop.eup %3215 }
 0x3a1   : > { %v1146_v48 = vadd.f32 1.0, %v3216_v46  ;;  %3219 = vrcp.f32 %v1143_v40  ;;  %2876 = vmatpush3.bf16.msra.mxu0 %v3062_v0 }
 0x3a2   : > { %v3218_v49 = vpop.eup %3217  ;;  %2877 = vmatprep.subr.bf16.mxu0 %v3063_v60 }
 0x3a3   : > { %3221 = vrcp.f32 %v1146_v48  ;;  %v1144_v50 = vadd.f32 1.0, %v3218_v49 }
 0x3a4   : > { %3223 = vrcp.f32 %v1145_v47 }
 0x3a5   : > { %3225 = vrcp.f32 %v1144_v50  ;;  %2878 = vmatpush3.bf16.msra.mxu0 %v3063_v60 }
 0x3a6   : > { %2879 = vmatprep.subr.bf16.mxu0 %v3064_v1 }
 0x3a9   : > { %2880 = vmatpush3.bf16.msra.mxu0 %v3064_v1 }
 0x3aa   : > { %2881 = vmatprep.subr.bf16.mxu0 %v3065_v2 }
 0x3ad   : > { %2882 = vmatpush3.bf16.msra.mxu0 %v3065_v2 }
 0x3ae   : > { %v3220_v51 = vpop.eup %3219  ;;  %2883 = vmatprep.subr.bf16.mxu0 %v3066_v32 }
 0x3af   : > { %v1167_v56 = vmul.f32 %v3220_v51, %v1101_v16 }
 0x3b0   : > { %v3222_v52 = vpop.eup %3221 }
 0x3b1   : > { %v3224_v53 = vpop.eup %3223  ;;  %v1170_v55 = vmul.f32 %v3222_v52, %v1112_v19  ;;  %2884 = vmatpush3.bf16.msra.mxu0 %v3066_v32 }
 0x3b2   : > { %v3226_v54 = vpop.eup %3225  ;;  %v1169_v58 = vmul.f32 %v3224_v53, %v1109_v11 }
 0x3b3   : > { %v1168_v29 = vmul.f32 %v3226_v54, %v1104_v21 }
 0x3b4   : > { %v1174_v63 = vpack.c.bf16 %v1170_v55, %v1169_v58 }
 0x3b5   : > { %v1173_v59 = vpack.c.bf16 %v1168_v29, %v1167_v56 }
 0x3b7   : > { %2865 = vmatprep.mubr.bf16.mxu1 %v1173_v59 }
 0x3b8   : > { %2866 = vmatmul.mubr.bf16.gmra.mxu1 %v1174_v63 }
 0x45c   : > { %v2863_v3 = vpop.f32.mrf.mxu1 }
 0x45d   : > { %v1291_v30 = vadd.f32 %v2863_v3, %v2501_v45 }
 0x45e   : > { %v1282_v4 = vpop.f32.mrf.mxu1 }
 0x45f   : > { %v1315_v5 = vadd.f32 %v1291_v30, %v3642_v14  ;;  %v1283_v7 = vadd.f32 %v2501_v45, %v1282_v4 }
 0x460   : > { %v2864_v57 = vpop.f32.mrf.mxu1 }
 0x461   : > { %v2512_v8 = vmul.f32 -1.442695, %v1315_v5  ;;  %v1313_v9 = vadd.f32 %v1283_v7, %v3638_v6  ;;  %v1294_v11 = vadd.f32 %v2864_v57, %v2501_v45  ;;  %v3067_v7 = vld [vmem:[%s3918_s5 + $0xb8] sm:$0xff]   ;;  %v3068_v57 = vld [vmem:[%s3918_s5 + $0xb0] sm:$0xff]  }
 0x462   : > { %v1285_v12 = vpop.f32.mrf.mxu1  ;;  %2893 = vmatprep.subr.bf16.mxu1 %v3067_v7 }
 0x463   : > { %v2510_v13 = vmul.f32 -1.442695, %v1313_v9  ;;  %v1316_v16 = vadd.f32 %v1294_v11, %v3636_v22  ;;  %v1286_v17 = vadd.f32 %v2501_v45, %v1285_v12  ;;  %3227 = vpow2.f32 %v2512_v8  ;;  %2894 = vmatpush3.bf16.msra.mxu1 %v3067_v7  ;;  %v3069_v8 = vld [vmem:[%s3918_s5 + $0xa8] sm:$0xff]   ;;  %v3071_v11 = vld [vmem:[%s3918_s5 + $0x98] sm:$0xff]   ;;  %v3072_v12 = vld [vmem:[%s3918_s5 + $0x90] sm:$0xff]  }
 0x464   : > { %2895 = vmatprep.subr.bf16.mxu1 %v3068_v57 }
 0x465   : > { %3229 = vpow2.f32 %v2510_v13  ;;  %v2513_v18 = vmul.f32 -1.442695, %v1316_v16  ;;  %v1314_v19 = vadd.f32 %v1286_v17, %v3640_v23  ;;  %v3073_v13 = vld [vmem:[%s3918_s5 + $0x88] sm:$0xff]   ;;  %v2535_v17 = vld [vmem:[%s3917_s4 + $0x2] ss:$0 sm:$0xff] }
 0x467   : > { %3231 = vpow2.f32 %v2513_v18  ;;  %v2511_v15 = vmul.f32 -1.442695, %v1314_v19  ;;  %2896 = vmatpush3.bf16.msra.mxu1 %v3068_v57 }
 0x468   : > { %2897 = vmatprep.subr.bf16.mxu1 %v3069_v8 }
 0x469   : > { %3233 = vpow2.f32 %v2511_v15 }
 0x46b   : > { %2898 = vmatpush3.bf16.msra.mxu1 %v3069_v8 }
 0x470   : > { %v3228_v14 = vpop.eup %3227 }
 0x471   : > { %v1347_v10 = vadd.f32 1.0, %v3228_v14 }
 0x472   : > { %v3230_v20 = vpop.eup %3229 }
 0x473   : > { %v1345_v21 = vadd.f32 1.0, %v3230_v20 }
 0x474   : > { %v3232_v24 = vpop.eup %3231 }
 0x475   : > { %v1348_v6 = vadd.f32 1.0, %v3232_v24  ;;  %3235 = vrcp.f32 %v1345_v21 }
 0x476   : > { %v3234_v25 = vpop.eup %3233 }
 0x477   : > { %3237 = vrcp.f32 %v1348_v6  ;;  %v1346_v26 = vadd.f32 1.0, %v3234_v25 }
 0x478   : > { %3239 = vrcp.f32 %v1347_v10  ;;  %v2867_v22 = vpop.f32.mrf.mxu1 }
 0x479   : > { %3241 = vrcp.f32 %v1346_v26  ;;  %v1307_v27 = vadd.f32 %v2867_v22, %v2501_v45 }
 0x47a   : > { %v1298_v28 = vpop.f32.mrf.mxu1 }
 0x47b   : > { %v1319_v23 = vadd.f32 %v1307_v27, %v3654_v44  ;;  %v1299_v31 = vadd.f32 %v2501_v45, %v1298_v28 }
 0x47c   : > { %v2868_v33 = vpop.f32.mrf.mxu1 }
 0x47d   : > { %v2516_v34 = vmul.f32 -1.442695, %v1319_v23  ;;  %v1317_v36 = vadd.f32 %v1299_v31, %v3650_v42  ;;  %v1310_v37 = vadd.f32 %v2868_v33, %v2501_v45 }
 0x47e   : > { %v1301_v38 = vpop.f32.mrf.mxu1 }
 0x47f   : > { %v2514_v39 = vmul.f32 -1.442695, %v1317_v36  ;;  %v1320_v40 = vadd.f32 %v1310_v37, %v3648_v41  ;;  %v1302_v46 = vadd.f32 %v2501_v45, %v1301_v38  ;;  %3243 = vpow2.f32 %v2516_v34 }
 0x481   : > { %3245 = vpow2.f32 %v2514_v39  ;;  %v2517_v47 = vmul.f32 -1.442695, %v1320_v40  ;;  %v1318_v48 = vadd.f32 %v1302_v46, %v3652_v43 }
 0x482   : > { %v3236_v49 = vpop.eup %3235 }
 0x483   : > { %3247 = vpow2.f32 %v2517_v47  ;;  %v2515_v50 = vmul.f32 -1.442695, %v1318_v48  ;;  %v3724_v42 = vmul.f32 %v3236_v49, %v1313_v9  ;;  %v3070_v9 = vld [vmem:[%s3918_s5 + $0xa0] sm:$0xff]  }
 0x484   : > { %v3238_v44 = vpop.eup %3237  ;;  %2899 = vmatprep.subr.bf16.mxu1 %v3070_v9 }
 0x485   : > { %v3240_v51 = vpop.eup %3239  ;;  %3249 = vpow2.f32 %v2515_v50  ;;  %v3722_v53 = vmul.f32 %v3238_v44, %v1316_v16  ;;  %2900 = vmatpush3.bf16.msra.mxu1 %v3070_v9  ;;  %v3074_v16 = vld [vmem:[%s3918_s5 + $0x80] sm:$0xff]  }
 0x486   : > { %v3242_v52 = vpop.eup %3241  ;;  %v3728_v41 = vmul.f32 %v3240_v51, %v1315_v5  ;;  %2901 = vmatprep.subr.bf16.mxu1 %v3071_v11 }
 0x487   : > { %v3726_v54 = vmul.f32 %v3242_v52, %v1314_v19 }
 0x488   : > { %v1378_v43 = vpack.c.bf16 %v3722_v53, %v3728_v41 }
 0x489   : > { %v1377_v55 = vpack.c.bf16 %v3726_v54, %v3724_v42  ;;  %2902 = vmatpush3.bf16.msra.mxu1 %v3071_v11 }
 0x48a   : > { %2903 = vmatprep.subr.bf16.mxu1 %v3072_v12 }
 0x48b   : > { %2885 = vmatprep.mubr.bf16.mxu0 %v1377_v55 }
 0x48c   : > { %2886 = vmatmul.mubr.bf16.vlgmr.msra.gmra.mxu0 %v1378_v43  ;;  %v3244_v56 = vpop.eup %3243 }
 0x48d   : > { %v1351_v63 = vadd.f32 1.0, %v3244_v56  ;;  %2904 = vmatpush3.bf16.msra.mxu1 %v3072_v12 }
 0x48e   : > { %v3246_v29 = vpop.eup %3245  ;;  %2905 = vmatprep.subr.bf16.mxu1 %v3073_v13 }
 0x48f   : > { %v1349_v58 = vadd.f32 1.0, %v3246_v29 }
 0x490   : > { %v3248_v59 = vpop.eup %3247 }
 0x491   : > { %v1352_v61 = vadd.f32 1.0, %v3248_v59  ;;  %3251 = vrcp.f32 %v1349_v58  ;;  %2906 = vmatpush3.bf16.msra.mxu1 %v3073_v13 }
 0x492   : > { %v3250_v35 = vpop.eup %3249  ;;  %2907 = vmatprep.subr.bf16.mxu1 %v3074_v16 }
 0x493   : > { %3253 = vrcp.f32 %v1352_v61  ;;  %v1350_v62 = vadd.f32 1.0, %v3250_v35 }
 0x494   : > { %3255 = vrcp.f32 %v1351_v63 }
 0x495   : > { %3257 = vrcp.f32 %v1350_v62  ;;  %2908 = vmatpush3.bf16.msra.mxu1 %v3074_v16 }
 0x49e   : > { %v3252_v0 = vpop.eup %3251 }
 0x49f   : > { %v3736_v45 = vmul.f32 %v3252_v0, %v1317_v36 }
 0x4a0   : > { %v3254_v60 = vpop.eup %3253 }
 0x4a1   : > { %v3256_v1 = vpop.eup %3255  ;;  %v3734_v32 = vmul.f32 %v3254_v60, %v1320_v40 }
 0x4a2   : > { %v3258_v2 = vpop.eup %3257  ;;  %v3740_v30 = vmul.f32 %v3256_v1, %v1319_v23 }
 0x4a3   : > { %v3738_v3 = vmul.f32 %v3258_v2, %v1318_v48 }
 0x4a4   : > { %v1380_v5 = vpack.c.bf16 %v3734_v32, %v3740_v30 }
 0x4a5   : > { %v1379_v4 = vpack.c.bf16 %v3738_v3, %v3736_v45 }
 0x4a7   : > { %2889 = vmatprep.mubr.bf16.mxu0 %v1379_v4 }
 0x4a8   : > { %2890 = vmatmul.mubr.bf16.gmra.mxu0 %v1380_v5 }
 0x54c   : > { %v2887_v18 = vpop.f32.mrf.mxu0 }
 0x54d   : > { %v1497_v19 = vadd.f32 %v2887_v18, %v2535_v17 }
 0x54e   : > { %v1488_v15 = vpop.f32.mrf.mxu0 }
 0x54f   : > { %v2546_v14 = vmul.f32 -1.442695, %v1497_v19  ;;  %v1489_v20 = vadd.f32 %v2535_v17, %v1488_v15 }
 0x550   : > { %v2888_v21 = vpop.f32.mrf.mxu0 }
 0x551   : > { %v2544_v24 = vmul.f32 -1.442695, %v1489_v20  ;;  %v1500_v10 = vadd.f32 %v2888_v21, %v2535_v17  ;;  %3259 = vpow2.f32 %v2546_v14  ;;  %v3076_v21 = vld [vmem:[%s3916_s3 + $0xf0] sm:$0xff]  }
 0x552   : > { %v1491_v6 = vpop.f32.mrf.mxu0 }
 0x553   : > { %3261 = vpow2.f32 %v2544_v24  ;;  %v2547_v25 = vmul.f32 -1.442695, %v1500_v10  ;;  %v1492_v26 = vadd.f32 %v2535_v17, %v1491_v6  ;;  %v3077_v24 = vld [vmem:[%s3916_s3 + $0xe8] sm:$0xff]   ;;  %v3079_v6 = vld [vmem:[%s3916_s3 + $0xd8] sm:$0xff]  }
 0x555   : > { %3263 = vpow2.f32 %v2547_v25  ;;  %v2545_v22 = vmul.f32 -1.442695, %v1492_v26  ;;  %v3080_v25 = vld [vmem:[%s3916_s3 + $0xd0] sm:$0xff]  }
 0x557   : > { %3265 = vpow2.f32 %v2545_v22  ;;  %v3082_v22 = vld [vmem:[%s3916_s3 + $0xc0] sm:$0xff]  }
 0x55e   : > { %v3260_v27 = vpop.eup %3259 }
 0x55f   : > { %v1545_v33 = vadd.f32 1.0, %v3260_v27  ;;  %v2569_v27 = vld [vmem:[%s3919_s6 + $0x2] ss:$0 sm:$0xff] }
 0x560   : > { %v3262_v28 = vpop.eup %3261 }
 0x561   : > { %v1543_v23 = vadd.f32 1.0, %v3262_v28 }
 0x562   : > { %v3264_v31 = vpop.eup %3263 }
 0x563   : > { %v1546_v34 = vadd.f32 1.0, %v3264_v31  ;;  %3267 = vrcp.f32 %v1543_v23 }
 0x564   : > { %v3266_v36 = vpop.eup %3265 }
 0x565   : > { %3269 = vrcp.f32 %v1546_v34  ;;  %v1544_v37 = vadd.f32 1.0, %v3266_v36 }
 0x566   : > { %3271 = vrcp.f32 %v1545_v33 }
 0x567   : > { %3273 = vrcp.f32 %v1544_v37 }
 0x568   : > { %v2891_v38 = vpop.f32.mrf.mxu0 }
 0x569   : > { %v1513_v39 = vadd.f32 %v2891_v38, %v2535_v17 }
 0x56a   : > { %v1504_v40 = vpop.f32.mrf.mxu0 }
 0x56b   : > { %v2550_v46 = vmul.f32 -1.442695, %v1513_v39  ;;  %v1505_v47 = vadd.f32 %v2535_v17, %v1504_v40 }
 0x56c   : > { %v2892_v48 = vpop.f32.mrf.mxu0 }
 0x56d   : > { %v2548_v49 = vmul.f32 -1.442695, %v1505_v47  ;;  %v1516_v50 = vadd.f32 %v2892_v48, %v2535_v17  ;;  %3275 = vpow2.f32 %v2550_v46 }
 0x56e   : > { %v1507_v44 = vpop.f32.mrf.mxu0 }
 0x56f   : > { %3277 = vpow2.f32 %v2548_v49  ;;  %v2551_v51 = vmul.f32 -1.442695, %v1516_v50  ;;  %v1508_v52 = vadd.f32 %v2535_v17, %v1507_v44 }
 0x570   : > { %v3268_v55 = vpop.eup %3267 }
 0x571   : > { %3279 = vpow2.f32 %v2551_v51  ;;  %v2549_v43 = vmul.f32 -1.442695, %v1508_v52  ;;  %v1567_v63 = vmul.f32 %v3268_v55, %v1489_v20  ;;  %v3075_v20 = vld [vmem:[%s3916_s3 + $0xf8] sm:$0xff]  }
 0x572   : > { %v3270_v56 = vpop.eup %3269  ;;  %2917 = vmatprep.subr.bf16.mxu0 %v3075_v20 }
 0x573   : > { %v3272_v29 = vpop.eup %3271  ;;  %3281 = vpow2.f32 %v2549_v43  ;;  %v1570_v59 = vmul.f32 %v3270_v56, %v1500_v10  ;;  %2918 = vmatpush3.bf16.msra.mxu0 %v3075_v20  ;;  %v3078_v10 = vld [vmem:[%s3916_s3 + $0xe0] sm:$0xff]  }
 0x574   : > { %v3274_v58 = vpop.eup %3273  ;;  %v1569_v35 = vmul.f32 %v3272_v29, %v1497_v19  ;;  %2919 = vmatprep.subr.bf16.mxu0 %v3076_v21 }
 0x575   : > { %v1568_v61 = vmul.f32 %v3274_v58, %v1492_v26  ;;  %v3081_v26 = vld [vmem:[%s3916_s3 + $0xc8] sm:$0xff]  }
 0x576   : > { %v1576_v0 = vpack.c.bf16 %v1570_v59, %v1569_v35 }
 0x577   : > { %v1575_v62 = vpack.c.bf16 %v1568_v61, %v1567_v63  ;;  %2920 = vmatpush3.bf16.msra.mxu0 %v3076_v21 }
 0x578   : > { %2921 = vmatprep.subr.bf16.mxu0 %v3077_v24 }
 0x579   : > { %2909 = vmatprep.mubr.bf16.mxu1 %v1575_v62 }
 0x57a   : > { %2910 = vmatmul.mubr.bf16.vlgmr.msra.gmra.mxu1 %v1576_v0  ;;  %v3276_v60 = vpop.eup %3275 }
 0x57b   : > { %v1549_v5 = vadd.f32 1.0, %v3276_v60  ;;  %2922 = vmatpush3.bf16.msra.mxu0 %v3077_v24 }
 0x57c   : > { %v3278_v1 = vpop.eup %3277  ;;  %2923 = vmatprep.subr.bf16.mxu0 %v3078_v10 }
 0x57d   : > { %v1547_v2 = vadd.f32 1.0, %v3278_v1 }
 0x57e   : > { %v3280_v4 = vpop.eup %3279 }
 0x57f   : > { %v1550_v7 = vadd.f32 1.0, %v3280_v4  ;;  %3283 = vrcp.f32 %v1547_v2  ;;  %2924 = vmatpush3.bf16.msra.mxu0 %v3078_v10 }
 0x580   : > { %v3282_v57 = vpop.eup %3281  ;;  %2925 = vmatprep.subr.bf16.mxu0 %v3079_v6 }
 0x581   : > { %3285 = vrcp.f32 %v1550_v7  ;;  %v1548_v8 = vadd.f32 1.0, %v3282_v57 }
 0x582   : > { %3287 = vrcp.f32 %v1549_v5 }
 0x583   : > { %3289 = vrcp.f32 %v1548_v8  ;;  %2926 = vmatpush3.bf16.msra.mxu0 %v3079_v6 }
 0x584   : > { %2927 = vmatprep.subr.bf16.mxu0 %v3080_v25 }
 0x587   : > { %2928 = vmatpush3.bf16.msra.mxu0 %v3080_v25 }
 0x588   : > { %2929 = vmatprep.subr.bf16.mxu0 %v3081_v26 }
 0x58b   : > { %2930 = vmatpush3.bf16.msra.mxu0 %v3081_v26 }
 0x58c   : > { %v3284_v9 = vpop.eup %3283  ;;  %2931 = vmatprep.subr.bf16.mxu0 %v3082_v22 }
 0x58d   : > { %v1571_v17 = vmul.f32 %v3284_v9, %v1505_v47 }
 0x58e   : > { %v3286_v11 = vpop.eup %3285 }
 0x58f   : > { %v3288_v12 = vpop.eup %3287  ;;  %v1574_v16 = vmul.f32 %v3286_v11, %v1516_v50  ;;  %2932 = vmatpush3.bf16.msra.mxu0 %v3082_v22 }
 0x590   : > { %v3290_v13 = vpop.eup %3289  ;;  %v1573_v19 = vmul.f32 %v3288_v12, %v1513_v39 }
 0x591   : > { %v1572_v18 = vmul.f32 %v3290_v13, %v1508_v52 }
 0x592   : > { %v1578_v14 = vpack.c.bf16 %v1574_v16, %v1573_v19 }
 0x593   : > { %v1577_v15 = vpack.c.bf16 %v1572_v18, %v1571_v17 }
 0x595   : > { %2913 = vmatprep.mubr.bf16.mxu1 %v1577_v15 }
 0x596   : > { %2914 = vmatmul.mubr.bf16.gmra.mxu1 %v1578_v14 }
 0x63a   : > { %v2911_v28 = vpop.f32.mrf.mxu1 }
 0x63b   : > { %v1695_v23 = vadd.f32 %v2911_v28, %v2569_v27 }
 0x63c   : > { %v1686_v31 = vpop.f32.mrf.mxu1 }
 0x63d   : > { %v1719_v33 = vadd.f32 %v1695_v23, %v3728_v41  ;;  %v1687_v34 = vadd.f32 %v2569_v27, %v1686_v31 }
 0x63e   : > { %v2912_v36 = vpop.f32.mrf.mxu1 }
 0x63f   : > { %v2580_v37 = vmul.f32 -1.442695, %v1719_v33  ;;  %v1717_v38 = vadd.f32 %v1687_v34, %v3724_v42  ;;  %v1698_v39 = vadd.f32 %v2912_v36, %v2569_v27  ;;  %v3083_v34 = vld [vmem:[%s3918_s5 + $0xf8] sm:$0xff]   ;;  %v3084_v36 = vld [vmem:[%s3918_s5 + $0xf0] sm:$0xff]  }
 0x640   : > { %v1689_v40 = vpop.f32.mrf.mxu1  ;;  %2941 = vmatprep.subr.bf16.mxu1 %v3083_v34 }
 0x641   : > { %v2578_v46 = vmul.f32 -1.442695, %v1717_v38  ;;  %v1720_v47 = vadd.f32 %v1698_v39, %v3722_v53  ;;  %v1690_v48 = vadd.f32 %v2569_v27, %v1689_v40  ;;  %3291 = vpow2.f32 %v2580_v37  ;;  %2942 = vmatpush3.bf16.msra.mxu1 %v3083_v34  ;;  %v3085_v37 = vld [vmem:[%s3918_s5 + $0xe8] sm:$0xff]   ;;  %v3087_v39 = vld [vmem:[%s3918_s5 + $0xd8] sm:$0xff]   ;;  %v3088_v40 = vld [vmem:[%s3918_s5 + $0xd0] sm:$0xff]  }
 0x642   : > { %2943 = vmatprep.subr.bf16.mxu1 %v3084_v36 }
 0x643   : > { %3293 = vpow2.f32 %v2578_v46  ;;  %v2581_v49 = vmul.f32 -1.442695, %v1720_v47  ;;  %v1718_v50 = vadd.f32 %v1690_v48, %v3726_v54  ;;  %v3089_v46 = vld [vmem:[%s3918_s5 + $0xc8] sm:$0xff]   ;;  %v2603_v48 = vld [vmem:[%s3917_s4 + $0x3] ss:$0 sm:$0xff] }
 0x645   : > { %3295 = vpow2.f32 %v2581_v49  ;;  %v2579_v44 = vmul.f32 -1.442695, %v1718_v50  ;;  %2944 = vmatpush3.bf16.msra.mxu1 %v3084_v36 }
 0x646   : > { %2945 = vmatprep.subr.bf16.mxu1 %v3085_v37 }
 0x647   : > { %3297 = vpow2.f32 %v2579_v44 }
 0x649   : > { %2946 = vmatpush3.bf16.msra.mxu1 %v3085_v37 }
 0x64e   : > { %v3292_v41 = vpop.eup %3291 }
 0x64f   : > { %v1751_v43 = vadd.f32 1.0, %v3292_v41 }
 0x650   : > { %v3294_v51 = vpop.eup %3293 }
 0x651   : > { %v1749_v52 = vadd.f32 1.0, %v3294_v51 }
 0x652   : > { %v3296_v55 = vpop.eup %3295 }
 0x653   : > { %v1752_v42 = vadd.f32 1.0, %v3296_v55  ;;  %3299 = vrcp.f32 %v1749_v52 }
 0x654   : > { %v3298_v56 = vpop.eup %3297 }
 0x655   : > { %3301 = vrcp.f32 %v1752_v42  ;;  %v1750_v29 = vadd.f32 1.0, %v3298_v56 }
 0x656   : > { %3303 = vrcp.f32 %v1751_v43  ;;  %v2915_v53 = vpop.f32.mrf.mxu1 }
 0x657   : > { %3305 = vrcp.f32 %v1750_v29  ;;  %v1711_v58 = vadd.f32 %v2915_v53, %v2569_v27 }
 0x658   : > { %v1702_v59 = vpop.f32.mrf.mxu1 }
 0x659   : > { %v1723_v54 = vadd.f32 %v1711_v58, %v3740_v30  ;;  %v1703_v63 = vadd.f32 %v2569_v27, %v1702_v59 }
 0x65a   : > { %v2916_v61 = vpop.f32.mrf.mxu1 }
 0x65b   : > { %v2584_v35 = vmul.f32 -1.442695, %v1723_v54  ;;  %v1721_v62 = vadd.f32 %v1703_v63, %v3736_v45  ;;  %v1714_v0 = vadd.f32 %v2916_v61, %v2569_v27 }
 0x65c   : > { %v1705_v60 = vpop.f32.mrf.mxu1 }
 0x65d   : > { %v2582_v1 = vmul.f32 -1.442695, %v1721_v62  ;;  %v1724_v2 = vadd.f32 %v1714_v0, %v3734_v32  ;;  %v1706_v4 = vadd.f32 %v2569_v27, %v1705_v60  ;;  %3307 = vpow2.f32 %v2584_v35 }
 0x65f   : > { %3309 = vpow2.f32 %v2582_v1  ;;  %v2585_v5 = vmul.f32 -1.442695, %v1724_v2  ;;  %v1722_v7 = vadd.f32 %v1706_v4, %v3738_v3 }
 0x660   : > { %v3300_v57 = vpop.eup %3299 }
 0x661   : > { %3311 = vpow2.f32 %v2585_v5  ;;  %v2583_v8 = vmul.f32 -1.442695, %v1722_v7  ;;  %v3810_v45 = vmul.f32 %v3300_v57, %v1717_v38  ;;  %v3086_v38 = vld [vmem:[%s3918_s5 + $0xe0] sm:$0xff]  }
 0x662   : > { %v3302_v30 = vpop.eup %3301  ;;  %2947 = vmatprep.subr.bf16.mxu1 %v3086_v38 }
 0x663   : > { %v3304_v9 = vpop.eup %3303  ;;  %3313 = vpow2.f32 %v2583_v8  ;;  %v3808_v12 = vmul.f32 %v3302_v30, %v1720_v47  ;;  %2948 = vmatpush3.bf16.msra.mxu1 %v3086_v38  ;;  %v3090_v47 = vld [vmem:[%s3918_s5 + $0xc0] sm:$0xff]  }
 0x664   : > { %v3306_v11 = vpop.eup %3305  ;;  %v3814_v32 = vmul.f32 %v3304_v9, %v1719_v33  ;;  %2949 = vmatprep.subr.bf16.mxu1 %v3087_v39 }
 0x665   : > { %v3812_v13 = vmul.f32 %v3306_v11, %v1718_v50 }
 0x666   : > { %v1782_v3 = vpack.c.bf16 %v3808_v12, %v3814_v32 }
 0x667   : > { %v1781_v16 = vpack.c.bf16 %v3812_v13, %v3810_v45  ;;  %2950 = vmatpush3.bf16.msra.mxu1 %v3087_v39 }
 0x668   : > { %2951 = vmatprep.subr.bf16.mxu1 %v3088_v40 }
 0x669   : > { %2933 = vmatprep.mubr.bf16.mxu0 %v1781_v16 }
 0x66a   : > { %2934 = vmatmul.mubr.bf16.vlgmr.msra.gmra.mxu0 %v1782_v3  ;;  %v3308_v17 = vpop.eup %3307 }
 0x66b   : > { %v1755_v14 = vadd.f32 1.0, %v3308_v17  ;;  %2952 = vmatpush3.bf16.msra.mxu1 %v3088_v40 }
 0x66c   : > { %v3310_v18 = vpop.eup %3309  ;;  %2953 = vmatprep.subr.bf16.mxu1 %v3089_v46 }
 0x66d   : > { %v1753_v19 = vadd.f32 1.0, %v3310_v18 }
 0x66e   : > { %v3312_v15 = vpop.eup %3311 }
 0x66f   : > { %v1756_v20 = vadd.f32 1.0, %v3312_v15  ;;  %3315 = vrcp.f32 %v1753_v19  ;;  %2954 = vmatpush3.bf16.msra.mxu1 %v3089_v46 }
 0x670   : > { %v3314_v21 = vpop.eup %3313  ;;  %2955 = vmatprep.subr.bf16.mxu1 %v3090_v47 }
 0x671   : > { %3317 = vrcp.f32 %v1756_v20  ;;  %v1754_v24 = vadd.f32 1.0, %v3314_v21 }
 0x672   : > { %3319 = vrcp.f32 %v1755_v14 }
 0x673   : > { %3321 = vrcp.f32 %v1754_v24  ;;  %2956 = vmatpush3.bf16.msra.mxu1 %v3090_v47 }
 0x67c   : > { %v3316_v10 = vpop.eup %3315 }
 0x67d   : > { %v3822_v27 = vmul.f32 %v3316_v10, %v1721_v62 }
 0x67e   : > { %v3318_v6 = vpop.eup %3317 }
 0x67f   : > { %v3320_v25 = vpop.eup %3319  ;;  %v3820_v22 = vmul.f32 %v3318_v6, %v1724_v2 }
 0x680   : > { %v3322_v26 = vpop.eup %3321  ;;  %v3826_v23 = vmul.f32 %v3320_v25, %v1723_v54 }
 0x681   : > { %v3824_v28 = vmul.f32 %v3322_v26, %v1722_v7 }
 0x682   : > { %v1784_v33 = vpack.c.bf16 %v3820_v22, %v3826_v23 }
 0x683   : > { %v1783_v31 = vpack.c.bf16 %v3824_v28, %v3822_v27 }
 0x685   : > { %2937 = vmatprep.mubr.bf16.mxu0 %v1783_v31 }
 0x686   : > { %2938 = vmatmul.mubr.bf16.gmra.mxu0 %v1784_v33 }
 0x72a   : > { %v2935_v49 = vpop.f32.mrf.mxu0 }
 0x72b   : > { %v1901_v50 = vadd.f32 %v2935_v49, %v2603_v48 }
 0x72c   : > { %v1892_v44 = vpop.f32.mrf.mxu0 }
 0x72d   : > { %v2614_v41 = vmul.f32 -1.442695, %v1901_v50  ;;  %v1893_v51 = vadd.f32 %v2603_v48, %v1892_v44 }
 0x72e   : > { %v2936_v52 = vpop.f32.mrf.mxu0 }
 0x72f   : > { %v2612_v55 = vmul.f32 -1.442695, %v1893_v51  ;;  %v1904_v43 = vadd.f32 %v2936_v52, %v2603_v48  ;;  %3323 = vpow2.f32 %v2614_v41  ;;  %v3092_v52 = vld [vmem:[%s3920_s7 + $0x30] sm:$0xff]  }
 0x730   : > { %v1895_v42 = vpop.f32.mrf.mxu0 }
 0x731   : > { %3325 = vpow2.f32 %v2612_v55  ;;  %v2615_v56 = vmul.f32 -1.442695, %v1904_v43  ;;  %v1896_v29 = vadd.f32 %v2603_v48, %v1895_v42  ;;  %v3093_v55 = vld [vmem:[%s3920_s7 + $0x28] sm:$0xff]   ;;  %v3095_v42 = vld [vmem:[%s3920_s7 + $0x18] sm:$0xff]  }
 0x733   : > { %3327 = vpow2.f32 %v2615_v56  ;;  %v2613_v53 = vmul.f32 -1.442695, %v1896_v29  ;;  %v3096_v56 = vld [vmem:[%s3920_s7 + $0x10] sm:$0xff]  }
 0x735   : > { %3329 = vpow2.f32 %v2613_v53  ;;  %v3098_v53 = vld [vmem:[%s3920_s7] sm:$0xff]  }
 0x73c   : > { %v3324_v58 = vpop.eup %3323 }
 0x73d   : > { %v1949_v61 = vadd.f32 1.0, %v3324_v58  ;;  %v2637_v58 = vld [vmem:[%s3919_s6 + $0x3] ss:$0 sm:$0xff] }
 0x73e   : > { %v3326_v59 = vpop.eup %3325 }
 0x73f   : > { %v1947_v54 = vadd.f32 1.0, %v3326_v59 }
 0x740   : > { %v3328_v63 = vpop.eup %3327 }
 0x741   : > { %v1950_v35 = vadd.f32 1.0, %v3328_v63  ;;  %3331 = vrcp.f32 %v1947_v54 }
 0x742   : > { %v3330_v62 = vpop.eup %3329 }
 0x743   : > { %3333 = vrcp.f32 %v1950_v35  ;;  %v1948_v0 = vadd.f32 1.0, %v3330_v62 }
 0x744   : > { %3335 = vrcp.f32 %v1949_v61 }
 0x745   : > { %3337 = vrcp.f32 %v1948_v0 }
 0x746   : > { %v2939_v60 = vpop.f32.mrf.mxu0 }
 0x747   : > { %v1917_v1 = vadd.f32 %v2939_v60, %v2603_v48 }
 0x748   : > { %v1908_v2 = vpop.f32.mrf.mxu0 }
 0x749   : > { %v2618_v4 = vmul.f32 -1.442695, %v1917_v1  ;;  %v1909_v5 = vadd.f32 %v2603_v48, %v1908_v2 }
 0x74a   : > { %v2940_v7 = vpop.f32.mrf.mxu0 }
 0x74b   : > { %v2616_v57 = vmul.f32 -1.442695, %v1909_v5  ;;  %v1920_v8 = vadd.f32 %v2940_v7, %v2603_v48  ;;  %3339 = vpow2.f32 %v2618_v4 }
 0x74c   : > { %v1911_v30 = vpop.f32.mrf.mxu0 }
 0x74d   : > { %3341 = vpow2.f32 %v2616_v57  ;;  %v2619_v9 = vmul.f32 -1.442695, %v1920_v8  ;;  %v1912_v11 = vadd.f32 %v2603_v48, %v1911_v30 }
 0x74e   : > { %v3332_v16 = vpop.eup %3331 }
 0x74f   : > { %3343 = vpow2.f32 %v2619_v9  ;;  %v2617_v3 = vmul.f32 -1.442695, %v1912_v11  ;;  %v1971_v14 = vmul.f32 %v3332_v16, %v1893_v51  ;;  %v3091_v51 = vld [vmem:[%s3920_s7 + $0x38] sm:$0xff]  }
 0x750   : > { %v3334_v17 = vpop.eup %3333  ;;  %2965 = vmatprep.subr.bf16.mxu0 %v3091_v51  ;;  %2989 = vmatprep.subr.bf16.mxu1 %v3091_v51 }
 0x751   : > { %v3336_v18 = vpop.eup %3335  ;;  %3345 = vpow2.f32 %v2617_v3  ;;  %v1974_v15 = vmul.f32 %v3334_v17, %v1904_v43  ;;  %2966 = vmatpush3.bf16.msra.mxu0 %v3091_v51  ;;  %v3094_v43 = vld [vmem:[%s3920_s7 + $0x20] sm:$0xff]  }
 0x752   : > { %v3338_v19 = vpop.eup %3337  ;;  %v1973_v21 = vmul.f32 %v3336_v18, %v1901_v50  ;;  %2967 = vmatprep.subr.bf16.mxu0 %v3092_v52 }
 0x753   : > { %v1972_v20 = vmul.f32 %v3338_v19, %v1896_v29  ;;  %v3097_v29 = vld [vmem:[%s3920_s7 + $0x8] sm:$0xff]  }
 0x754   : > { %v1980_v10 = vpack.c.bf16 %v1974_v15, %v1973_v21 }
 0x755   : > { %v1979_v24 = vpack.c.bf16 %v1972_v20, %v1971_v14  ;;  %2968 = vmatpush3.bf16.msra.mxu0 %v3092_v52 }
 0x756   : > { %2969 = vmatprep.subr.bf16.mxu0 %v3093_v55 }
 0x757   : > { %2957 = vmatprep.mubr.bf16.mxu1 %v1979_v24 }
 0x758   : > { %2958 = vmatmul.mubr.bf16.vlgmr.msra.gmra.mxu1 %v1980_v10  ;;  %v3340_v6 = vpop.eup %3339 }
 0x759   : > { %v1953_v33 = vadd.f32 1.0, %v3340_v6  ;;  %2997 = vmatpush3.bf16.msra.mxu1 %v3091_v51  ;;  %2970 = vmatpush3.bf16.msra.mxu0 %v3093_v55 }
 0x75a   : > { %v3342_v25 = vpop.eup %3341  ;;  %2990 = vmatprep.subr.bf16.mxu1 %v3092_v52  ;;  %2971 = vmatprep.subr.bf16.mxu0 %v3094_v43 }
 0x75b   : > { %v1951_v26 = vadd.f32 1.0, %v3342_v25 }
 0x75c   : > { %v3344_v31 = vpop.eup %3343 }
 0x75d   : > { %v1954_v34 = vadd.f32 1.0, %v3344_v31  ;;  %3347 = vrcp.f32 %v1951_v26  ;;  %2998 = vmatpush3.bf16.msra.mxu1 %v3092_v52  ;;  %2972 = vmatpush3.bf16.msra.mxu0 %v3094_v43 }
 0x75e   : > { %v3346_v36 = vpop.eup %3345  ;;  %2991 = vmatprep.subr.bf16.mxu1 %v3093_v55  ;;  %2973 = vmatprep.subr.bf16.mxu0 %v3095_v42 }
 0x75f   : > { %3349 = vrcp.f32 %v1954_v34  ;;  %v1952_v37 = vadd.f32 1.0, %v3346_v36 }
 0x760   : > { %3351 = vrcp.f32 %v1953_v33 }
 0x761   : > { %3353 = vrcp.f32 %v1952_v37  ;;  %2999 = vmatpush3.bf16.msra.mxu1 %v3093_v55  ;;  %2974 = vmatpush3.bf16.msra.mxu0 %v3095_v42 }
 0x762   : > { %2992 = vmatprep.subr.bf16.mxu1 %v3094_v43  ;;  %2975 = vmatprep.subr.bf16.mxu0 %v3096_v56 }
 0x765   : > { %3000 = vmatpush3.bf16.msra.mxu1 %v3094_v43  ;;  %2976 = vmatpush3.bf16.msra.mxu0 %v3096_v56 }
 0x766   : > { %2993 = vmatprep.subr.bf16.mxu1 %v3095_v42  ;;  %2977 = vmatprep.subr.bf16.mxu0 %v3097_v29 }
 0x769   : > { %3001 = vmatpush3.bf16.msra.mxu1 %v3095_v42  ;;  %2978 = vmatpush3.bf16.msra.mxu0 %v3097_v29 }
 0x76a   : > { %v3348_v38 = vpop.eup %3347  ;;  %2994 = vmatprep.subr.bf16.mxu1 %v3096_v56  ;;  %2979 = vmatprep.subr.bf16.mxu0 %v3098_v53 }
 0x76b   : > { %v1975_v48 = vmul.f32 %v3348_v38, %v1909_v5 }
 0x76c   : > { %v3350_v39 = vpop.eup %3349 }
 0x76d   : > { %v3352_v40 = vpop.eup %3351  ;;  %v1978_v47 = vmul.f32 %v3350_v39, %v1920_v8  ;;  %3002 = vmatpush3.bf16.msra.mxu1 %v3096_v56  ;;  %2980 = vmatpush3.bf16.msra.mxu0 %v3098_v53 }
 0x76e   : > { %v3354_v46 = vpop.eup %3353  ;;  %v1977_v50 = vmul.f32 %v3352_v40, %v1917_v1  ;;  %2995 = vmatprep.subr.bf16.mxu1 %v3097_v29 }
 0x76f   : > { %v1976_v49 = vmul.f32 %v3354_v46, %v1912_v11 }
 0x770   : > { %v1982_v41 = vpack.c.bf16 %v1978_v47, %v1977_v50 }
 0x771   : > { %v1981_v44 = vpack.c.bf16 %v1976_v49, %v1975_v48  ;;  %3003 = vmatpush3.bf16.msra.mxu1 %v3097_v29 }
 0x772   : > { %2996 = vmatprep.subr.bf16.mxu1 %v3098_v53 }
 0x773   : > { %2961 = vmatprep.mubr.bf16.mxu1 %v1981_v44 }
 0x774   : > { %2962 = vmatmul.mubr.bf16.gmra.mxu1 %v1982_v41 }
 0x775   : > { %3004 = vmatpush3.bf16.msra.mxu1 %v3098_v53 }
 0x818   : > { %v2959_v59 = vpop.f32.mrf.mxu1 }
 0x819   : > { %v2099_v54 = vadd.f32 %v2959_v59, %v2637_v58 }
 0x81a   : > { %v2090_v63 = vpop.f32.mrf.mxu1 }
 0x81b   : > { %v2123_v61 = vadd.f32 %v2099_v54, %v3814_v32  ;;  %v2091_v35 = vadd.f32 %v2637_v58, %v2090_v63 }
 0x81c   : > { %v2960_v62 = vpop.f32.mrf.mxu1 }
 0x81d   : > { %v2648_v0 = vmul.f32 -1.442695, %v2123_v61  ;;  %v2121_v60 = vadd.f32 %v2091_v35, %v3810_v45  ;;  %v2102_v1 = vadd.f32 %v2960_v62, %v2637_v58  ;;  %v2662_v35 = vld [vmem:[%s3921_s8] ss:$0 sm:$0xff] }
 0x81e   : > { %v2093_v2 = vpop.f32.mrf.mxu1 }
 0x81f   : > { %v2646_v4 = vmul.f32 -1.442695, %v2121_v60  ;;  %v2124_v5 = vadd.f32 %v2102_v1, %v3808_v12  ;;  %v2094_v7 = vadd.f32 %v2637_v58, %v2093_v2  ;;  %3355 = vpow2.f32 %v2648_v0 }
 0x821   : > { %3357 = vpow2.f32 %v2646_v4  ;;  %v2649_v57 = vmul.f32 -1.442695, %v2124_v5  ;;  %v2122_v8 = vadd.f32 %v2094_v7, %v3812_v13 }
 0x823   : > { %3359 = vpow2.f32 %v2649_v57  ;;  %v2647_v30 = vmul.f32 -1.442695, %v2122_v8 }
 0x825   : > { %3361 = vpow2.f32 %v2647_v30 }
 0x82c   : > { %v3356_v32 = vpop.eup %3355 }
 0x82d   : > { %v2155_v3 = vadd.f32 1.0, %v3356_v32 }
 0x82e   : > { %v3358_v9 = vpop.eup %3357 }
 0x82f   : > { %v2153_v11 = vadd.f32 1.0, %v3358_v9 }
 0x830   : > { %v3360_v16 = vpop.eup %3359 }
 0x831   : > { %v2156_v45 = vadd.f32 1.0, %v3360_v16  ;;  %3363 = vrcp.f32 %v2153_v11 }
 0x832   : > { %v3362_v17 = vpop.eup %3361 }
 0x833   : > { %3365 = vrcp.f32 %v2156_v45  ;;  %v2154_v18 = vadd.f32 1.0, %v3362_v17 }
 0x834   : > { %3367 = vrcp.f32 %v2155_v3  ;;  %v2963_v12 = vpop.f32.mrf.mxu1 }
 0x835   : > { %3369 = vrcp.f32 %v2154_v18  ;;  %v2115_v19 = vadd.f32 %v2963_v12, %v2637_v58 }
 0x836   : > { %v2106_v15 = vpop.f32.mrf.mxu1 }
 0x837   : > { %v2127_v13 = vadd.f32 %v2115_v19, %v3826_v23  ;;  %v2107_v14 = vadd.f32 %v2637_v58, %v2106_v15 }
 0x838   : > { %v2964_v20 = vpop.f32.mrf.mxu1 }
 0x839   : > { %v2652_v21 = vmul.f32 -1.442695, %v2127_v13  ;;  %v2125_v24 = vadd.f32 %v2107_v14, %v3822_v27  ;;  %v2118_v10 = vadd.f32 %v2964_v20, %v2637_v58 }
 0x83a   : > { %v2109_v6 = vpop.f32.mrf.mxu1 }
 0x83b   : > { %v2650_v25 = vmul.f32 -1.442695, %v2125_v24  ;;  %v2128_v26 = vadd.f32 %v2118_v10, %v3820_v22  ;;  %v2110_v31 = vadd.f32 %v2637_v58, %v2109_v6  ;;  %3371 = vpow2.f32 %v2652_v21 }
 0x83d   : > { %3373 = vpow2.f32 %v2650_v25  ;;  %v2653_v33 = vmul.f32 -1.442695, %v2128_v26  ;;  %v2126_v34 = vadd.f32 %v2110_v31, %v3824_v28 }
 0x83e   : > { %v3364_v36 = vpop.eup %3363 }
 0x83f   : > { %3375 = vpow2.f32 %v2653_v33  ;;  %v2651_v37 = vmul.f32 -1.442695, %v2126_v34  ;;  %v2177_v27 = vmul.f32 %v3364_v36, %v2121_v60 }
 0x840   : > { %v3366_v23 = vpop.eup %3365 }
 0x841   : > { %v3368_v38 = vpop.eup %3367  ;;  %3377 = vpow2.f32 %v2651_v37  ;;  %v2180_v40 = vmul.f32 %v3366_v23, %v2124_v5 }
 0x842   : > { %v3370_v39 = vpop.eup %3369  ;;  %v2179_v47 = vmul.f32 %v3368_v38, %v2123_v61 }
 0x843   : > { %v2178_v46 = vmul.f32 %v3370_v39, %v2122_v8 }
 0x844   : > { %v2186_v49 = vpack.c.bf16 %v2180_v40, %v2179_v47 }
 0x845   : > { %v2185_v48 = vpack.c.bf16 %v2178_v46, %v2177_v27 }
 0x847   : > { %2981 = vmatprep.mubr.bf16.mxu0 %v2185_v48 }
 0x848   : > { %2982 = vmatmul.mubr.bf16.vlgmr.msra.gmra.mxu0 %v2186_v49  ;;  %v3372_v22 = vpop.eup %3371 }
 0x849   : > { %v2159_v28 = vadd.f32 1.0, %v3372_v22 }
 0x84a   : > { %v3374_v50 = vpop.eup %3373 }
 0x84b   : > { %v2157_v44 = vadd.f32 1.0, %v3374_v50 }
 0x84c   : > { %v3376_v41 = vpop.eup %3375 }
 0x84d   : > { %v2160_v51 = vadd.f32 1.0, %v3376_v41  ;;  %3379 = vrcp.f32 %v2157_v44 }
 0x84e   : > { %v3378_v52 = vpop.eup %3377 }
 0x84f   : > { %3381 = vrcp.f32 %v2160_v51  ;;  %v2158_v55 = vadd.f32 1.0, %v3378_v52 }
 0x850   : > { %3383 = vrcp.f32 %v2159_v28 }
 0x851   : > { %3385 = vrcp.f32 %v2158_v55 }
 0x85a   : > { %v3380_v43 = vpop.eup %3379 }
 0x85b   : > { %v2181_v58 = vmul.f32 %v3380_v43, %v2125_v24 }
 0x85c   : > { %v3382_v42 = vpop.eup %3381 }
 0x85d   : > { %v3384_v56 = vpop.eup %3383  ;;  %v2184_v53 = vmul.f32 %v3382_v42, %v2128_v26 }
 0x85e   : > { %v3386_v29 = vpop.eup %3385  ;;  %v2183_v54 = vmul.f32 %v3384_v56, %v2127_v13 }
 0x85f   : > { %v2182_v59 = vmul.f32 %v3386_v29, %v2126_v34 }
 0x860   : > { %v2188_v61 = vpack.c.bf16 %v2184_v53, %v2183_v54 }
 0x861   : > { %v2187_v63 = vpack.c.bf16 %v2182_v59, %v2181_v58 }
 0x863   : > { %2985 = vmatprep.mubr.bf16.mxu1 %v2187_v63 }
 0x864   : > { %2986 = vmatmul.mubr.bf16.vlgmr.msra.gmra.mxu1 %v2188_v61 }
 0x908   : > { %v2983_v62 = vpop.f32.mrf.mxu0 }
 0x909   : > { %v2327_v0 = vadd.f32 %v2983_v62, %v2662_v35 }
 0x90a   : > { %v2287_v60 = vpop.f32.mrf.mxu0 }
 0x90b   : > { %2336 = vst.msk [vmem:[%s334_s22 + $0x10] sm:$0xff] %vm2333_vm0, %v2327_v0  ;;  %v2325_v1 = vadd.f32 %v2662_v35, %v2287_v60 }
 0x90c   : > { %v2984_v2 = vpop.f32.mrf.mxu0 }
 0x90d   : > { %2334 = vst.msk [vmem:[%s334_s22] sm:$0xff] %vm2333_vm0, %v2325_v1  ;;  %v2328_v4 = vadd.f32 %v2984_v2, %v2662_v35 }
 0x90e   : > { %v2290_v5 = vpop.f32.mrf.mxu0 }
 0x90f   : > { %2337 = vst.msk [vmem:[%s334_s22 + $0x18] sm:$0xff] %vm2333_vm0, %v2328_v4  ;;  %v2326_v7 = vadd.f32 %v2662_v35, %v2290_v5 }
 0x911   : > { %2335 = vst.msk [vmem:[%s334_s22 + $0x8] sm:$0xff] %vm2333_vm0, %v2326_v7 }
 0x924   : > { %v2987_v57 = vpop.f32.mrf.mxu1 }
 0x925   : > { %v2331_v8 = vadd.f32 %v2987_v57, %v2662_v35 }
 0x926   : > { %v2303_v30 = vpop.f32.mrf.mxu1 }
 0x927   : > { %2340 = vst.msk [vmem:[%s334_s22 + $0x30] sm:$0xff] %vm2333_vm0, %v2331_v8  ;;  %v2329_v32 = vadd.f32 %v2662_v35, %v2303_v30 }
 0x928   : > { %v2988_v9 = vpop.f32.mrf.mxu1 }
 0x929   : > { %2338 = vst.msk [vmem:[%s334_s22 + $0x20] sm:$0xff] %vm2333_vm0, %v2329_v32  ;;  %v2332_v11 = vadd.f32 %v2988_v9, %v2662_v35 }
 0x92a   : > { %v2306_v16 = vpop.f32.mrf.mxu1 }
 0x92b   : > { %2341 = vst.msk [vmem:[%s334_s22 + $0x38] sm:$0xff] %vm2333_vm0, %v2332_v11  ;;  %v2330_v3 = vadd.f32 %v2662_v35, %v2306_v16 }
 0x92d   : > { %2339 = vst.msk [vmem:[%s334_s22 + $0x28] sm:$0xff] %vm2333_vm0, %v2330_v3 }
 0x92e PF: > { %s19_s30 = sadd.s32 1, %s3393_s30  }
 0x92f   : > { %p16_p4 = scmp.ge.s32.totalorder %s19_s30, 4  }
 0x931   :  { %18 = sbr.rel (!%p16_p4) target bundleno = 1 (0x1), region = 98 }

</bundles_post_ra>
